<compile_context>
chip_gen: v5e
topology: v5e:2x2
jax: 0.10.0
libtpu: 0.0.40
codegen_flags: <defaults>
</compile_context>

<pallas_src>
import jax
import jax.numpy as jnp
from jax.experimental import pallas as pl
from jax.experimental.pallas import tpu as pltpu


def _fused_lstm_fc_kernel(x_ref, wih0_ref, b0_ref, wbig_ref, b1_ref,
                          h0_ref, c0_ref, fcw_ref, fcb_ref,
                          out_ref, hN_ref, cN_ref,
                          gadd_s, ys_s):
    """Fused 2-layer (skewed) LSTM + FC head over the whole sequence.

    x_ref   : (T*Bp, E)   time-major flattened embeddings (Bp = batch padded to 8)
    wih0    : (E, 4H)     layer-0 input weights (gate order i, f, g, o)
    b0      : (1, 4H)     layer-0 fused bias (b_ih + b_hh)
    wbig    : (2H, 8H)    block-stacked [[W_hh0, W_ih1], [0, W_hh1]]
    b1      : (1, 4H)     layer-1 fused bias
    h0/c0   : (2, Bp, H)  initial hidden/cell states for both layers
    fcw     : (H, Vp), fcb: (1, Vp)   lane-dense (Vp multiple of 128) FC head
    out_ref : (T, Bp, Vp) time-major logits (wrapper transposes/slices)
    hN/cN   : (2, Bp, H)  final states
    gadd_s  : (T, Bp, 8H) scratch: per-step additive gate term [gx_t | b1]
    ys_s    : (T, Bp, H)  scratch: layer-1 hidden states feeding the FC head
    """
    T, Bp, H = ys_s.shape
    H4, H8 = 4 * H, 8 * H
    Vp = out_ref.shape[-1]

    # ---- pre-pass: layer-0 input projection for ALL timesteps (one batched MXU
    # matmul), packed next to the (broadcast) layer-1 bias so the recurrence
    # does a single full-width (Bp, 8H) add per step.
    gx = (jnp.dot(x_ref[...], wih0_ref[...],
                  preferred_element_type=jnp.float32) + b0_ref[...])     # (T*Bp, 4H)
    b1b = jnp.broadcast_to(b1_ref[...], (T * Bp, H4))
    gadd_s[...] = jnp.concatenate([gx, b1b], axis=1).reshape(T, Bp, H8)

    # Resident weights / constants hoisted out of the recurrence.
    wbig = wbig_ref[...]
    lane = jax.lax.broadcasted_iota(jnp.int32, (Bp, H8), 1)
    # tanh ("g") gate lanes: [2H,3H) for layer 0, [6H,7H) for layer 1.
    is_g = ((lane >= 2 * H) & (lane < 3 * H)) | ((lane >= 6 * H) & (lane < 7 * H))

    def sigmoid(v):
        # Exact reciprocal: gates feed the recurrent c/h chain, so approximation
        # error would compound over T steps and two layers.
        return pl.reciprocal(1.0 + jnp.exp(-v))

    def fused_gates(xh, gadd_row):
        # ONE (Bp, 2H) @ (2H, 8H) MXU push covers layer-0's recurrent gate term
        # AND layer-1's full gates for the skewed step; nonlinearities are
        # applied once to the whole 8H tile and the g-gates lane-selected.
        g = jnp.dot(xh, wbig, preferred_element_type=jnp.float32) + gadd_row
        return jnp.where(is_g, jnp.tanh(g), sigmoid(g))

    def cell(act, off, c_prev):
        i = act[:, off + 0 * H: off + 1 * H]
        f = act[:, off + 1 * H: off + 2 * H]
        g = act[:, off + 2 * H: off + 3 * H]
        o = act[:, off + 3 * H: off + 4 * H]
        c_new = f * c_prev + i * g
        h_new = o * jnp.tanh(c_new)
        return h_new, c_new

    h0_init, h1_init = h0_ref[0], h0_ref[1]
    c0_init, c1_init = c0_ref[0], c0_ref[1]

    # ---- skewed recurrence ------------------------------------------------
    # Peeled k = 0: layer-0 step 0 only (layer-1 half of the tile is unused).
    act = fused_gates(jnp.concatenate([h0_init, h1_init], axis=1), gadd_s[0])
    h0c, c0c = cell(act, 0, c0_init)
    carry0 = (h0c, c0c, h1_init, c1_init)

    def step(k, carry):
        h0p, c0p, h1p, c1p = carry                         # h0(k-1), h1(k-2)
        act = fused_gates(jnp.concatenate([h0p, h1p], axis=1), gadd_s[k])
        h0n, c0n = cell(act, 0, c0p)                       # layer-0 step k
        h1n, c1n = cell(act, H4, c1p)                      # layer-1 step k-1
        ys_s[k - 1] = h1n                                  # stays in VMEM
        return (h0n, c0n, h1n, c1n)

    # Full unroll only for short static T; partial unroll keeps vreg pressure
    # (64 vregs) bounded at realistic sequence lengths.
    unroll = True if T <= 16 else 8
    h0f, c0f, h1p, c1p = jax.lax.fori_loop(1, T, step, carry0, unroll=unroll)

    # Peeled k = T: layer-1 step T-1 only (layer-0 half computed but discarded).
    act = fused_gates(jnp.concatenate([h0f, h1p], axis=1), gadd_s[T - 1])
    h1f, c1f = cell(act, H4, c1p)
    ys_s[T - 1] = h1f

    # Final states written once (single write-back, no per-step dependency).
    hN_ref[0] = h0f
    hN_ref[1] = h1f
    cN_ref[0] = c0f
    cN_ref[1] = c1f

    # ---- FC head: ONE lane-dense matmul over all T*Bp rows + one block store.
    ys = ys_s[...].reshape(T * Bp, H)
    logits = (jnp.dot(ys, fcw_ref[...], preferred_element_type=jnp.float32)
              + fcb_ref[...])
    out_ref[...] = logits.reshape(T, Bp, Vp)


@jax.jit
def shayari_lstm_forward(tokens, hidden, params):
    """tokens: (B, T) int32; hidden: (h0, c0), each (num_layers=2, B, H)."""
    h0_all, c0_all = hidden
    B, T = tokens.shape
    L, _, H = h0_all.shape
    V = params["fc_w_t"].shape[-1]
    E = params["embedding"].shape[-1]

    Bp = pl.cdiv(B, 8) * 8          # pad batch to f32 sublane count
    Vp = pl.cdiv(V, 128) * 128      # lane-dense logits / FC weights

    # Pad batch with <PAD> tokens (id 0 -> zero embedding) and zero states.
    tok_p = jnp.zeros((Bp, T), tokens.dtype).at[:B].set(tokens)
    h_p = jnp.zeros((L, Bp, H), jnp.float32).at[:, :B].set(h0_all)
    c_p = jnp.zeros((L, Bp, H), jnp.float32).at[:, :B].set(c0_all)

    # Lane-dense FC head: pad vocab dim up to a multiple of 128.
    fcw, fcb = params["fc_w_t"], params["fc_b"]
    if Vp != V:
        fcw = jnp.pad(fcw, ((0, 0), (0, Vp - V)))
        fcb = jnp.pad(fcb, ((0, 0), (0, Vp - V)))

    # Embedding gather stays as XLA glue; gather time-major directly by
    # transposing the tiny int token matrix (not the float activations).
    x = jnp.take(params["embedding"], tok_p.T, axis=0)     # (T, Bp, E)
    x = x.reshape(T * Bp, E)

    out, hN, cN = pl.pallas_call(
        _fused_lstm_fc_kernel,
        out_shape=(jax.ShapeDtypeStruct((T, Bp, Vp), jnp.float32),
                   jax.ShapeDtypeStruct((2, Bp, H), jnp.float32),
                   jax.ShapeDtypeStruct((2, Bp, H), jnp.float32)),
        scratch_shapes=[pltpu.VMEM((T, Bp, 8 * H), jnp.float32),
                        pltpu.VMEM((T, Bp, H), jnp.float32)],
    )(x, params["w_ih0"], params["b0"], params["w_big"], params["b1"],
      h_p, c_p, fcw, fcb)

    # Kernel emits time-major lane-padded logits; un-pad in tiny XLA glue.
    logits = out.transpose(1, 0, 2)[:B, :, :V]
    return logits, (hN[:, :B], cN[:, :B])


def init_params(key, vocab_size, embed_dim, hidden_dim):
    """2-layer LSTM params, pre-transposed for row@W matmuls, PyTorch gate
    order (i, f, g, o), biases fused (b_ih + b_hh), plus the block-stacked
    recurrence weight used by the skewed fused step."""
    ks = jax.random.split(key, 11)
    scale = 0.1
    H = hidden_dim
    emb = scale * jax.random.normal(ks[0], (vocab_size, embed_dim), jnp.float32)
    emb = emb.at[0].set(0.0)                               # padding_idx=0
    w_ih0 = scale * jax.random.normal(ks[1], (embed_dim, 4 * H), jnp.float32)
    w_hh0 = scale * jax.random.normal(ks[2], (H, 4 * H), jnp.float32)
    b0 = (scale * jax.random.normal(ks[3], (4 * H,), jnp.float32)
          + scale * jax.random.normal(ks[4], (4 * H,), jnp.float32))
    w_ih1 = scale * jax.random.normal(ks[5], (H, 4 * H), jnp.float32)
    w_hh1 = scale * jax.random.normal(ks[6], (H, 4 * H), jnp.float32)
    b1 = (scale * jax.random.normal(ks[7], (4 * H,), jnp.float32)
          + scale * jax.random.normal(ks[8], (4 * H,), jnp.float32))
    fc_w = scale * jax.random.normal(ks[9], (vocab_size, H), jnp.float32)
    fc_b = scale * jax.random.normal(ks[10], (vocab_size,), jnp.float32)
    # [h0_prev, h1_prev] @ [[W_hh0, W_ih1], [0, W_hh1]] -> [g0_rec | g1_full]
    w_big = jnp.concatenate(
        [jnp.concatenate([w_hh0, w_ih1], axis=1),
         jnp.concatenate([jnp.zeros((H, 4 * H), jnp.float32), w_hh1], axis=1)],
        axis=0)                                            # (2H, 8H)
    return {
        "embedding": emb,
        "w_ih0": w_ih0, "b0": b0.reshape(1, 4 * H),
        "w_big": w_big, "b1": b1.reshape(1, 4 * H),
        # raw per-layer recurrent weights kept only for the pure-JAX reference
        "w_hh0": w_hh0, "w_ih1": w_ih1, "w_hh1": w_hh1,
        "fc_w_t": fc_w.T, "fc_b": fc_b.reshape(1, vocab_size),
    }


def reference_forward(tokens, hidden, params):
    """Pure-JAX (XLA) reference with identical semantics, for validation."""
    h_all, c_all = hidden
    H = h_all.shape[-1]
    emb = jnp.take(params["embedding"], tokens, axis=0)    # (B, T, E)
    w_ih0, w_hh0, b0 = params["w_ih0"], params["w_hh0"], params["b0"]
    w_ih1, w_hh1, b1 = params["w_ih1"], params["w_hh1"], params["b1"]

    def gates(z):
        return (jax.nn.sigmoid(z[:, 0 * H:1 * H]), jax.nn.sigmoid(z[:, 1 * H:2 * H]),
                jnp.tanh(z[:, 2 * H:3 * H]), jax.nn.sigmoid(z[:, 3 * H:4 * H]))

    h0, c0, h1, c1 = h_all[0], c_all[0], h_all[1], c_all[1]
    outs = []
    for t in range(tokens.shape[1]):
        x_t = emb[:, t, :]
        i, f, g, o = gates(x_t @ w_ih0 + h0 @ w_hh0 + b0)
        c0 = f * c0 + i * g
        h0 = o * jnp.tanh(c0)
        i, f, g, o = gates(h0 @ w_ih1 + h1 @ w_hh1 + b1)
        c1 = f * c1 + i * g
        h1 = o * jnp.tanh(c1)
        outs.append(h1)
    out = jnp.stack(outs, axis=1)                          # (B, T, H)
    logits = out @ params["fc_w_t"] + params["fc_b"]
    return logits, (jnp.stack([h0, h1]), jnp.stack([c0, c1]))


if __name__ == "__main__":
    # Small, module-consistent shapes.
    vocab_size, embed_dim, hidden_dim, num_layers = 64, 32, 32, 2
    batch, seq = 2, 8

    key = jax.random.PRNGKey(0)
    k_tok, k_par = jax.random.split(key)
    tokens = jax.random.randint(k_tok, (batch, seq), 0, vocab_size, dtype=jnp.int32)
    params = init_params(k_par, vocab_size, embed_dim, hidden_dim)

    # init_hidden: zeros of shape (num_layers, batch, hidden_dim)
    h0 = jnp.zeros((num_layers, batch, hidden_dim), jnp.float32)
    c0 = jnp.zeros((num_layers, batch, hidden_dim), jnp.float32)

    logits, (hN, cN) = shayari_lstm_forward(tokens, (h0, c0), params)
    jax.block_until_ready((logits, hN, cN))

    assert logits.shape == (batch, seq, vocab_size)
    assert hN.shape == (num_layers, batch, hidden_dim)
    assert cN.shape == (num_layers, batch, hidden_dim)

    # Numerical check vs. pure-JAX reference (exact sigmoid in-kernel now, so a
    # tight tolerance holds; residual diff is EUP exp/tanh vs XLA rounding).
    ref_logits, (ref_h, ref_c) = reference_forward(tokens, (h0, c0), params)
    assert jnp.allclose(logits, ref_logits, atol=1e-3, rtol=1e-3)
    assert jnp.allclose(hN, ref_h, atol=1e-3, rtol=1e-3)
    assert jnp.allclose(cN, ref_c, atol=1e-3, rtol=1e-3)

    print("KERNEL_OK")
</pallas_src>

<mosaic_0001>
module attributes {stable_mosaic.version = 11 : i64} {
  func.func @_fused_lstm_fc_kernel(%arg0: memref<64x32xf32, #tpu.memory_space<vmem>>, %arg1: memref<32x128xf32, #tpu.memory_space<vmem>>, %arg2: memref<1x128xf32, #tpu.memory_space<vmem>>, %arg3: memref<64x256xf32, #tpu.memory_space<vmem>>, %arg4: memref<1x128xf32, #tpu.memory_space<vmem>>, %arg5: memref<2x8x32xf32, #tpu.memory_space<vmem>>, %arg6: memref<2x8x32xf32, #tpu.memory_space<vmem>>, %arg7: memref<32x128xf32, #tpu.memory_space<vmem>>, %arg8: memref<1x128xf32, #tpu.memory_space<vmem>>, %arg9: memref<8x8x128xf32, #tpu.memory_space<vmem>>, %arg10: memref<2x8x32xf32, #tpu.memory_space<vmem>>, %arg11: memref<2x8x32xf32, #tpu.memory_space<vmem>>, %arg12: memref<8x8x256xf32, #tpu.memory_space<vmem>>, %arg13: memref<8x8x32xf32, #tpu.memory_space<vmem>>) attributes {dimension_semantics = [], scalar_prefetch = 0 : i64, scratch_operands = 2 : i64, tpu.core_type = #tpu.core_type<tc>} {
    %c0 = arith.constant 0 : index
    %c0_0 = arith.constant 0 : index
    %0 = vector.load %arg0[%c0, %c0_0] : memref<64x32xf32, #tpu.memory_space<vmem>>, vector<64x32xf32>
    %c0_1 = arith.constant 0 : index
    %c0_2 = arith.constant 0 : index
    %1 = vector.load %arg1[%c0_1, %c0_2] : memref<32x128xf32, #tpu.memory_space<vmem>>, vector<32x128xf32>
    %cst = arith.constant dense<0.000000e+00> : vector<64x128xf32>
    %2 = tpu.matmul %0, %1, %cst {dimension_numbers = #tpu.dot_dimension_numbers<[1], [0], [0], [1], [0, 0, 1, 1], [], []>} : vector<64x32xf32>, vector<32x128xf32>, vector<64x128xf32> -> vector<64x128xf32>
    %c0_3 = arith.constant 0 : index
    %c0_4 = arith.constant 0 : index
    %3 = vector.load %arg2[%c0_3, %c0_4] : memref<1x128xf32, #tpu.memory_space<vmem>>, vector<1x128xf32>
    %4 = vector.broadcast %3 : vector<1x128xf32> to vector<64x128xf32>
    %5 = arith.addf %2, %4 : vector<64x128xf32>
    %c0_5 = arith.constant 0 : index
    %c0_6 = arith.constant 0 : index
    %6 = vector.load %arg4[%c0_5, %c0_6] : memref<1x128xf32, #tpu.memory_space<vmem>>, vector<1x128xf32>
    %7 = vector.shape_cast %6 : vector<1x128xf32> to vector<1x128xf32>
    %8 = vector.broadcast %7 : vector<1x128xf32> to vector<64x128xf32>
    %9 = tpu.concatenate %5, %8 in 1 : vector<64x128xf32>, vector<64x128xf32> -> vector<64x256xf32>
    %10 = vector.shape_cast %9 : vector<64x256xf32> to vector<8x8x256xf32>
    %c0_7 = arith.constant 0 : index
    %c0_8 = arith.constant 0 : index
    %c0_9 = arith.constant 0 : index
    %11 = vector.load %arg12[%c0_7, %c0_8, %c0_9] : memref<8x8x256xf32, #tpu.memory_space<vmem>>, vector<8x8x256xf32>
    tpu.vector_store %arg12[%c0_7, %c0_8, %c0_9], %10 {strides = array<i32>} : memref<8x8x256xf32, #tpu.memory_space<vmem>>, vector<8x8x256xf32>,
    %c0_10 = arith.constant 0 : index
    %c0_11 = arith.constant 0 : index
    %12 = vector.load %arg3[%c0_10, %c0_11] : memref<64x256xf32, #tpu.memory_space<vmem>>, vector<64x256xf32>
    %13 = tpu.iota {dimensions = array<i32: 1>} : vector<8x256xi32>
    %c64_i32 = arith.constant 64 : i32
    %14 = vector.broadcast %c64_i32 : i32 to vector<8x256xi32>
    %15 = arith.cmpi sge, %13, %14 : vector<8x256xi32>
    %c96_i32 = arith.constant 96 : i32
    %16 = vector.broadcast %c96_i32 : i32 to vector<8x256xi32>
    %17 = arith.cmpi slt, %13, %16 : vector<8x256xi32>
    %18 = arith.andi %15, %17 : vector<8x256xi1>
    %c192_i32 = arith.constant 192 : i32
    %19 = vector.broadcast %c192_i32 : i32 to vector<8x256xi32>
    %20 = arith.cmpi sge, %13, %19 : vector<8x256xi32>
    %c224_i32 = arith.constant 224 : i32
    %21 = vector.broadcast %c224_i32 : i32 to vector<8x256xi32>
    %22 = arith.cmpi slt, %13, %21 : vector<8x256xi32>
    %23 = arith.andi %20, %22 : vector<8x256xi1>
    %24 = arith.ori %18, %23 : vector<8x256xi1>
    %c0_12 = arith.constant 0 : index
    %c0_13 = arith.constant 0 : index
    %c0_14 = arith.constant 0 : index
    %25 = vector.load %arg5[%c0_12, %c0_13, %c0_14] : memref<2x8x32xf32, #tpu.memory_space<vmem>>, vector<1x8x32xf32>
    %26 = vector.shape_cast %25 : vector<1x8x32xf32> to vector<8x32xf32>
    %c1 = arith.constant 1 : index
    %c0_15 = arith.constant 0 : index
    %c0_16 = arith.constant 0 : index
    %27 = vector.load %arg5[%c1, %c0_15, %c0_16] : memref<2x8x32xf32, #tpu.memory_space<vmem>>, vector<1x8x32xf32>
    %28 = vector.shape_cast %27 : vector<1x8x32xf32> to vector<8x32xf32>
    %c0_17 = arith.constant 0 : index
    %c0_18 = arith.constant 0 : index
    %c0_19 = arith.constant 0 : index
    %29 = vector.load %arg6[%c0_17, %c0_18, %c0_19] : memref<2x8x32xf32, #tpu.memory_space<vmem>>, vector<1x8x32xf32>
    %30 = vector.shape_cast %29 : vector<1x8x32xf32> to vector<8x32xf32>
    %c1_20 = arith.constant 1 : index
    %c0_21 = arith.constant 0 : index
    %c0_22 = arith.constant 0 : index
    %31 = vector.load %arg6[%c1_20, %c0_21, %c0_22] : memref<2x8x32xf32, #tpu.memory_space<vmem>>, vector<1x8x32xf32>
    %32 = vector.shape_cast %31 : vector<1x8x32xf32> to vector<8x32xf32>
    %33 = tpu.concatenate %26, %28 in 1 : vector<8x32xf32>, vector<8x32xf32> -> vector<8x64xf32>
    %c0_23 = arith.constant 0 : index
    %c0_24 = arith.constant 0 : index
    %c0_25 = arith.constant 0 : index
    %34 = vector.load %arg12[%c0_23, %c0_24, %c0_25] : memref<8x8x256xf32, #tpu.memory_space<vmem>>, vector<1x8x256xf32>
    %35 = vector.shape_cast %34 : vector<1x8x256xf32> to vector<8x256xf32>
    %cst_26 = arith.constant dense<0.000000e+00> : vector<8x256xf32>
    %36 = tpu.matmul %33, %12, %cst_26 {dimension_numbers = #tpu.dot_dimension_numbers<[1], [0], [0], [1], [0, 0, 1, 1], [], []>} : vector<8x64xf32>, vector<64x256xf32>, vector<8x256xf32> -> vector<8x256xf32>
    %37 = arith.addf %36, %35 : vector<8x256xf32>
    %38 = math.tanh %37 : vector<8x256xf32>
    %cst_27 = arith.constant 0.000000e+00 : f32
    %39 = vector.broadcast %cst_27 : f32 to vector<8x256xf32>
    %40 = arith.subf %39, %37 : vector<8x256xf32>
    %41 = math.exp %40 : vector<8x256xf32>
    %cst_28 = arith.constant 1.000000e+00 : f32
    %42 = vector.broadcast %cst_28 : f32 to vector<8x256xf32>
    %43 = arith.addf %42, %41 : vector<8x256xf32>
    %44 = tpu.reciprocal %43 : vector<8x256xf32> -> vector<8x256xf32>
    %45 = arith.select %24, %38, %44 : vector<8x256xi1>, vector<8x256xf32>
    %46 = vector.extract_strided_slice %45 {offsets = [0, 0], sizes = [8, 32], strides = [1, 1]} : vector<8x256xf32> to vector<8x32xf32>
    %47 = vector.extract_strided_slice %45 {offsets = [0, 32], sizes = [8, 32], strides = [1, 1]} : vector<8x256xf32> to vector<8x32xf32>
    %48 = vector.extract_strided_slice %45 {offsets = [0, 64], sizes = [8, 32], strides = [1, 1]} : vector<8x256xf32> to vector<8x32xf32>
    %49 = vector.extract_strided_slice %45 {offsets = [0, 96], sizes = [8, 32], strides = [1, 1]} : vector<8x256xf32> to vector<8x32xf32>
    %50 = arith.mulf %47, %30 : vector<8x32xf32>
    %51 = arith.mulf %46, %48 : vector<8x32xf32>
    %52 = arith.addf %50, %51 : vector<8x32xf32>
    %53 = math.tanh %52 : vector<8x32xf32>
    %54 = arith.mulf %49, %53 : vector<8x32xf32>
    %c1_i32 = arith.constant 1 : i32
    %55 = tpu.concatenate %54, %28 in 1 : vector<8x32xf32>, vector<8x32xf32> -> vector<8x64xf32>
    %56 = arith.index_cast %c1_i32 : i32 to index
    %c0_29 = arith.constant 0 : index
    %c0_30 = arith.constant 0 : index
    %57 = vector.load %arg12[%56, %c0_29, %c0_30] : memref<8x8x256xf32, #tpu.memory_space<vmem>>, vector<1x8x256xf32>
    %58 = vector.shape_cast %57 : vector<1x8x256xf32> to vector<8x256xf32>
    %cst_31 = arith.constant dense<0.000000e+00> : vector<8x256xf32>
    %59 = tpu.matmul %55, %12, %cst_31 {dimension_numbers = #tpu.dot_dimension_numbers<[1], [0], [0], [1], [0, 0, 1, 1], [], []>} : vector<8x64xf32>, vector<64x256xf32>, vector<8x256xf32> -> vector<8x256xf32>
    %60 = arith.addf %59, %58 : vector<8x256xf32>
    %61 = math.tanh %60 : vector<8x256xf32>
    %cst_32 = arith.constant 0.000000e+00 : f32
    %62 = vector.broadcast %cst_32 : f32 to vector<8x256xf32>
    %63 = arith.subf %62, %60 : vector<8x256xf32>
    %64 = math.exp %63 : vector<8x256xf32>
    %cst_33 = arith.constant 1.000000e+00 : f32
    %65 = vector.broadcast %cst_33 : f32 to vector<8x256xf32>
    %66 = arith.addf %65, %64 : vector<8x256xf32>
    %67 = tpu.reciprocal %66 : vector<8x256xf32> -> vector<8x256xf32>
    %68 = arith.select %24, %61, %67 : vector<8x256xi1>, vector<8x256xf32>
    %69 = vector.extract_strided_slice %68 {offsets = [0, 0], sizes = [8, 32], strides = [1, 1]} : vector<8x256xf32> to vector<8x32xf32>
    %70 = vector.extract_strided_slice %68 {offsets = [0, 32], sizes = [8, 32], strides = [1, 1]} : vector<8x256xf32> to vector<8x32xf32>
    %71 = vector.extract_strided_slice %68 {offsets = [0, 64], sizes = [8, 32], strides = [1, 1]} : vector<8x256xf32> to vector<8x32xf32>
    %72 = vector.extract_strided_slice %68 {offsets = [0, 96], sizes = [8, 32], strides = [1, 1]} : vector<8x256xf32> to vector<8x32xf32>
    %73 = arith.mulf %70, %52 : vector<8x32xf32>
    %74 = arith.mulf %69, %71 : vector<8x32xf32>
    %75 = arith.addf %73, %74 : vector<8x32xf32>
    %76 = math.tanh %75 : vector<8x32xf32>
    %77 = arith.mulf %72, %76 : vector<8x32xf32>
    %78 = vector.extract_strided_slice %68 {offsets = [0, 128], sizes = [8, 32], strides = [1, 1]} : vector<8x256xf32> to vector<8x32xf32>
    %79 = vector.extract_strided_slice %68 {offsets = [0, 160], sizes = [8, 32], strides = [1, 1]} : vector<8x256xf32> to vector<8x32xf32>
    %80 = vector.extract_strided_slice %68 {offsets = [0, 192], sizes = [8, 32], strides = [1, 1]} : vector<8x256xf32> to vector<8x32xf32>
    %81 = vector.extract_strided_slice %68 {offsets = [0, 224], sizes = [8, 32], strides = [1, 1]} : vector<8x256xf32> to vector<8x32xf32>
    %82 = arith.mulf %79, %32 : vector<8x32xf32>
    %83 = arith.mulf %78, %80 : vector<8x32xf32>
    %84 = arith.addf %82, %83 : vector<8x32xf32>
    %85 = math.tanh %84 : vector<8x32xf32>
    %86 = arith.mulf %81, %85 : vector<8x32xf32>
    %c1_i32_34 = arith.constant 1 : i32
    %87 = arith.subi %c1_i32, %c1_i32_34 : i32
    %88 = arith.index_cast %87 : i32 to index
    %c0_35 = arith.constant 0 : index
    %c0_36 = arith.constant 0 : index
    %89 = vector.load %arg13[%88, %c0_35, %c0_36] : memref<8x8x32xf32, #tpu.memory_space<vmem>>, vector<1x8x32xf32>
    %90 = vector.shape_cast %89 : vector<1x8x32xf32> to vector<8x32xf32>
    %91 = vector.shape_cast %86 : vector<8x32xf32> to vector<1x8x32xf32>
    tpu.vector_store %arg13[%88, %c0_35, %c0_36], %91 {strides = array<i32>} : memref<8x8x32xf32, #tpu.memory_space<vmem>>, vector<1x8x32xf32>,
    %c2_i32 = arith.constant 2 : i32
    %92 = tpu.concatenate %77, %86 in 1 : vector<8x32xf32>, vector<8x32xf32> -> vector<8x64xf32>
    %93 = arith.index_cast %c2_i32 : i32 to index
    %c0_37 = arith.constant 0 : index
    %c0_38 = arith.constant 0 : index
    %94 = vector.load %arg12[%93, %c0_37, %c0_38] : memref<8x8x256xf32, #tpu.memory_space<vmem>>, vector<1x8x256xf32>
    %95 = vector.shape_cast %94 : vector<1x8x256xf32> to vector<8x256xf32>
    %cst_39 = arith.constant dense<0.000000e+00> : vector<8x256xf32>
    %96 = tpu.matmul %92, %12, %cst_39 {dimension_numbers = #tpu.dot_dimension_numbers<[1], [0], [0], [1], [0, 0, 1, 1], [], []>} : vector<8x64xf32>, vector<64x256xf32>, vector<8x256xf32> -> vector<8x256xf32>
    %97 = arith.addf %96, %95 : vector<8x256xf32>
    %98 = math.tanh %97 : vector<8x256xf32>
    %cst_40 = arith.constant 0.000000e+00 : f32
    %99 = vector.broadcast %cst_40 : f32 to vector<8x256xf32>
    %100 = arith.subf %99, %97 : vector<8x256xf32>
    %101 = math.exp %100 : vector<8x256xf32>
    %cst_41 = arith.constant 1.000000e+00 : f32
    %102 = vector.broadcast %cst_41 : f32 to vector<8x256xf32>
    %103 = arith.addf %102, %101 : vector<8x256xf32>
    %104 = tpu.reciprocal %103 : vector<8x256xf32> -> vector<8x256xf32>
    %105 = arith.select %24, %98, %104 : vector<8x256xi1>, vector<8x256xf32>
    %106 = vector.extract_strided_slice %105 {offsets = [0, 0], sizes = [8, 32], strides = [1, 1]} : vector<8x256xf32> to vector<8x32xf32>
    %107 = vector.extract_strided_slice %105 {offsets = [0, 32], sizes = [8, 32], strides = [1, 1]} : vector<8x256xf32> to vector<8x32xf32>
    %108 = vector.extract_strided_slice %105 {offsets = [0, 64], sizes = [8, 32], strides = [1, 1]} : vector<8x256xf32> to vector<8x32xf32>
    %109 = vector.extract_strided_slice %105 {offsets = [0, 96], sizes = [8, 32], strides = [1, 1]} : vector<8x256xf32> to vector<8x32xf32>
    %110 = arith.mulf %107, %75 : vector<8x32xf32>
    %111 = arith.mulf %106, %108 : vector<8x32xf32>
    %112 = arith.addf %110, %111 : vector<8x32xf32>
    %113 = math.tanh %112 : vector<8x32xf32>
    %114 = arith.mulf %109, %113 : vector<8x32xf32>
    %115 = vector.extract_strided_slice %105 {offsets = [0, 128], sizes = [8, 32], strides = [1, 1]} : vector<8x256xf32> to vector<8x32xf32>
    %116 = vector.extract_strided_slice %105 {offsets = [0, 160], sizes = [8, 32], strides = [1, 1]} : vector<8x256xf32> to vector<8x32xf32>
    %117 = vector.extract_strided_slice %105 {offsets = [0, 192], sizes = [8, 32], strides = [1, 1]} : vector<8x256xf32> to vector<8x32xf32>
    %118 = vector.extract_strided_slice %105 {offsets = [0, 224], sizes = [8, 32], strides = [1, 1]} : vector<8x256xf32> to vector<8x32xf32>
    %119 = arith.mulf %116, %84 : vector<8x32xf32>
    %120 = arith.mulf %115, %117 : vector<8x32xf32>
    %121 = arith.addf %119, %120 : vector<8x32xf32>
    %122 = math.tanh %121 : vector<8x32xf32>
    %123 = arith.mulf %118, %122 : vector<8x32xf32>
    %c1_i32_42 = arith.constant 1 : i32
    %124 = arith.subi %c2_i32, %c1_i32_42 : i32
    %125 = arith.index_cast %124 : i32 to index
    %c0_43 = arith.constant 0 : index
    %c0_44 = arith.constant 0 : index
    %126 = vector.load %arg13[%125, %c0_43, %c0_44] : memref<8x8x32xf32, #tpu.memory_space<vmem>>, vector<1x8x32xf32>
    %127 = vector.shape_cast %126 : vector<1x8x32xf32> to vector<8x32xf32>
    %128 = vector.shape_cast %123 : vector<8x32xf32> to vector<1x8x32xf32>
    tpu.vector_store %arg13[%125, %c0_43, %c0_44], %128 {strides = array<i32>} : memref<8x8x32xf32, #tpu.memory_space<vmem>>, vector<1x8x32xf32>,
    %c3_i32 = arith.constant 3 : i32
    %129 = tpu.concatenate %114, %123 in 1 : vector<8x32xf32>, vector<8x32xf32> -> vector<8x64xf32>
    %130 = arith.index_cast %c3_i32 : i32 to index
    %c0_45 = arith.constant 0 : index
    %c0_46 = arith.constant 0 : index
    %131 = vector.load %arg12[%130, %c0_45, %c0_46] : memref<8x8x256xf32, #tpu.memory_space<vmem>>, vector<1x8x256xf32>
    %132 = vector.shape_cast %131 : vector<1x8x256xf32> to vector<8x256xf32>
    %cst_47 = arith.constant dense<0.000000e+00> : vector<8x256xf32>
    %133 = tpu.matmul %129, %12, %cst_47 {dimension_numbers = #tpu.dot_dimension_numbers<[1], [0], [0], [1], [0, 0, 1, 1], [], []>} : vector<8x64xf32>, vector<64x256xf32>, vector<8x256xf32> -> vector<8x256xf32>
    %134 = arith.addf %133, %132 : vector<8x256xf32>
    %135 = math.tanh %134 : vector<8x256xf32>
    %cst_48 = arith.constant 0.000000e+00 : f32
    %136 = vector.broadcast %cst_48 : f32 to vector<8x256xf32>
    %137 = arith.subf %136, %134 : vector<8x256xf32>
    %138 = math.exp %137 : vector<8x256xf32>
    %cst_49 = arith.constant 1.000000e+00 : f32
    %139 = vector.broadcast %cst_49 : f32 to vector<8x256xf32>
    %140 = arith.addf %139, %138 : vector<8x256xf32>
    %141 = tpu.reciprocal %140 : vector<8x256xf32> -> vector<8x256xf32>
    %142 = arith.select %24, %135, %141 : vector<8x256xi1>, vector<8x256xf32>
    %143 = vector.extract_strided_slice %142 {offsets = [0, 0], sizes = [8, 32], strides = [1, 1]} : vector<8x256xf32> to vector<8x32xf32>
    %144 = vector.extract_strided_slice %142 {offsets = [0, 32], sizes = [8, 32], strides = [1, 1]} : vector<8x256xf32> to vector<8x32xf32>
    %145 = vector.extract_strided_slice %142 {offsets = [0, 64], sizes = [8, 32], strides = [1, 1]} : vector<8x256xf32> to vector<8x32xf32>
    %146 = vector.extract_strided_slice %142 {offsets = [0, 96], sizes = [8, 32], strides = [1, 1]} : vector<8x256xf32> to vector<8x32xf32>
    %147 = arith.mulf %144, %112 : vector<8x32xf32>
    %148 = arith.mulf %143, %145 : vector<8x32xf32>
    %149 = arith.addf %147, %148 : vector<8x32xf32>
    %150 = math.tanh %149 : vector<8x32xf32>
    %151 = arith.mulf %146, %150 : vector<8x32xf32>
    %152 = vector.extract_strided_slice %142 {offsets = [0, 128], sizes = [8, 32], strides = [1, 1]} : vector<8x256xf32> to vector<8x32xf32>
    %153 = vector.extract_strided_slice %142 {offsets = [0, 160], sizes = [8, 32], strides = [1, 1]} : vector<8x256xf32> to vector<8x32xf32>
    %154 = vector.extract_strided_slice %142 {offsets = [0, 192], sizes = [8, 32], strides = [1, 1]} : vector<8x256xf32> to vector<8x32xf32>
    %155 = vector.extract_strided_slice %142 {offsets = [0, 224], sizes = [8, 32], strides = [1, 1]} : vector<8x256xf32> to vector<8x32xf32>
    %156 = arith.mulf %153, %121 : vector<8x32xf32>
    %157 = arith.mulf %152, %154 : vector<8x32xf32>
    %158 = arith.addf %156, %157 : vector<8x32xf32>
    %159 = math.tanh %158 : vector<8x32xf32>
    %160 = arith.mulf %155, %159 : vector<8x32xf32>
    %c1_i32_50 = arith.constant 1 : i32
    %161 = arith.subi %c3_i32, %c1_i32_50 : i32
    %162 = arith.index_cast %161 : i32 to index
    %c0_51 = arith.constant 0 : index
    %c0_52 = arith.constant 0 : index
    %163 = vector.load %arg13[%162, %c0_51, %c0_52] : memref<8x8x32xf32, #tpu.memory_space<vmem>>, vector<1x8x32xf32>
    %164 = vector.shape_cast %163 : vector<1x8x32xf32> to vector<8x32xf32>
    %165 = vector.shape_cast %160 : vector<8x32xf32> to vector<1x8x32xf32>
    tpu.vector_store %arg13[%162, %c0_51, %c0_52], %165 {strides = array<i32>} : memref<8x8x32xf32, #tpu.memory_space<vmem>>, vector<1x8x32xf32>,
    %c4_i32 = arith.constant 4 : i32
    %166 = tpu.concatenate %151, %160 in 1 : vector<8x32xf32>, vector<8x32xf32> -> vector<8x64xf32>
    %167 = arith.index_cast %c4_i32 : i32 to index
    %c0_53 = arith.constant 0 : index
    %c0_54 = arith.constant 0 : index
    %168 = vector.load %arg12[%167, %c0_53, %c0_54] : memref<8x8x256xf32, #tpu.memory_space<vmem>>, vector<1x8x256xf32>
    %169 = vector.shape_cast %168 : vector<1x8x256xf32> to vector<8x256xf32>
    %cst_55 = arith.constant dense<0.000000e+00> : vector<8x256xf32>
    %170 = tpu.matmul %166, %12, %cst_55 {dimension_numbers = #tpu.dot_dimension_numbers<[1], [0], [0], [1], [0, 0, 1, 1], [], []>} : vector<8x64xf32>, vector<64x256xf32>, vector<8x256xf32> -> vector<8x256xf32>
    %171 = arith.addf %170, %169 : vector<8x256xf32>
    %172 = math.tanh %171 : vector<8x256xf32>
    %cst_56 = arith.constant 0.000000e+00 : f32
    %173 = vector.broadcast %cst_56 : f32 to vector<8x256xf32>
    %174 = arith.subf %173, %171 : vector<8x256xf32>
    %175 = math.exp %174 : vector<8x256xf32>
    %cst_57 = arith.constant 1.000000e+00 : f32
    %176 = vector.broadcast %cst_57 : f32 to vector<8x256xf32>
    %177 = arith.addf %176, %175 : vector<8x256xf32>
    %178 = tpu.reciprocal %177 : vector<8x256xf32> -> vector<8x256xf32>
    %179 = arith.select %24, %172, %178 : vector<8x256xi1>, vector<8x256xf32>
    %180 = vector.extract_strided_slice %179 {offsets = [0, 0], sizes = [8, 32], strides = [1, 1]} : vector<8x256xf32> to vector<8x32xf32>
    %181 = vector.extract_strided_slice %179 {offsets = [0, 32], sizes = [8, 32], strides = [1, 1]} : vector<8x256xf32> to vector<8x32xf32>
    %182 = vector.extract_strided_slice %179 {offsets = [0, 64], sizes = [8, 32], strides = [1, 1]} : vector<8x256xf32> to vector<8x32xf32>
    %183 = vector.extract_strided_slice %179 {offsets = [0, 96], sizes = [8, 32], strides = [1, 1]} : vector<8x256xf32> to vector<8x32xf32>
    %184 = arith.mulf %181, %149 : vector<8x32xf32>
    %185 = arith.mulf %180, %182 : vector<8x32xf32>
    %186 = arith.addf %184, %185 : vector<8x32xf32>
    %187 = math.tanh %186 : vector<8x32xf32>
    %188 = arith.mulf %183, %187 : vector<8x32xf32>
    %189 = vector.extract_strided_slice %179 {offsets = [0, 128], sizes = [8, 32], strides = [1, 1]} : vector<8x256xf32> to vector<8x32xf32>
    %190 = vector.extract_strided_slice %179 {offsets = [0, 160], sizes = [8, 32], strides = [1, 1]} : vector<8x256xf32> to vector<8x32xf32>
    %191 = vector.extract_strided_slice %179 {offsets = [0, 192], sizes = [8, 32], strides = [1, 1]} : vector<8x256xf32> to vector<8x32xf32>
    %192 = vector.extract_strided_slice %179 {offsets = [0, 224], sizes = [8, 32], strides = [1, 1]} : vector<8x256xf32> to vector<8x32xf32>
    %193 = arith.mulf %190, %158 : vector<8x32xf32>
    %194 = arith.mulf %189, %191 : vector<8x32xf32>
    %195 = arith.addf %193, %194 : vector<8x32xf32>
    %196 = math.tanh %195 : vector<8x32xf32>
    %197 = arith.mulf %192, %196 : vector<8x32xf32>
    %c1_i32_58 = arith.constant 1 : i32
    %198 = arith.subi %c4_i32, %c1_i32_58 : i32
    %199 = arith.index_cast %198 : i32 to index
    %c0_59 = arith.constant 0 : index
    %c0_60 = arith.constant 0 : index
    %200 = vector.load %arg13[%199, %c0_59, %c0_60] : memref<8x8x32xf32, #tpu.memory_space<vmem>>, vector<1x8x32xf32>
    %201 = vector.shape_cast %200 : vector<1x8x32xf32> to vector<8x32xf32>
    %202 = vector.shape_cast %197 : vector<8x32xf32> to vector<1x8x32xf32>
    tpu.vector_store %arg13[%199, %c0_59, %c0_60], %202 {strides = array<i32>} : memref<8x8x32xf32, #tpu.memory_space<vmem>>, vector<1x8x32xf32>,
    %c5_i32 = arith.constant 5 : i32
    %203 = tpu.concatenate %188, %197 in 1 : vector<8x32xf32>, vector<8x32xf32> -> vector<8x64xf32>
    %204 = arith.index_cast %c5_i32 : i32 to index
    %c0_61 = arith.constant 0 : index
    %c0_62 = arith.constant 0 : index
    %205 = vector.load %arg12[%204, %c0_61, %c0_62] : memref<8x8x256xf32, #tpu.memory_space<vmem>>, vector<1x8x256xf32>
    %206 = vector.shape_cast %205 : vector<1x8x256xf32> to vector<8x256xf32>
    %cst_63 = arith.constant dense<0.000000e+00> : vector<8x256xf32>
    %207 = tpu.matmul %203, %12, %cst_63 {dimension_numbers = #tpu.dot_dimension_numbers<[1], [0], [0], [1], [0, 0, 1, 1], [], []>} : vector<8x64xf32>, vector<64x256xf32>, vector<8x256xf32> -> vector<8x256xf32>
    %208 = arith.addf %207, %206 : vector<8x256xf32>
    %209 = math.tanh %208 : vector<8x256xf32>
    %cst_64 = arith.constant 0.000000e+00 : f32
    %210 = vector.broadcast %cst_64 : f32 to vector<8x256xf32>
    %211 = arith.subf %210, %208 : vector<8x256xf32>
    %212 = math.exp %211 : vector<8x256xf32>
    %cst_65 = arith.constant 1.000000e+00 : f32
    %213 = vector.broadcast %cst_65 : f32 to vector<8x256xf32>
    %214 = arith.addf %213, %212 : vector<8x256xf32>
    %215 = tpu.reciprocal %214 : vector<8x256xf32> -> vector<8x256xf32>
    %216 = arith.select %24, %209, %215 : vector<8x256xi1>, vector<8x256xf32>
    %217 = vector.extract_strided_slice %216 {offsets = [0, 0], sizes = [8, 32], strides = [1, 1]} : vector<8x256xf32> to vector<8x32xf32>
    %218 = vector.extract_strided_slice %216 {offsets = [0, 32], sizes = [8, 32], strides = [1, 1]} : vector<8x256xf32> to vector<8x32xf32>
    %219 = vector.extract_strided_slice %216 {offsets = [0, 64], sizes = [8, 32], strides = [1, 1]} : vector<8x256xf32> to vector<8x32xf32>
    %220 = vector.extract_strided_slice %216 {offsets = [0, 96], sizes = [8, 32], strides = [1, 1]} : vector<8x256xf32> to vector<8x32xf32>
    %221 = arith.mulf %218, %186 : vector<8x32xf32>
    %222 = arith.mulf %217, %219 : vector<8x32xf32>
    %223 = arith.addf %221, %222 : vector<8x32xf32>
    %224 = math.tanh %223 : vector<8x32xf32>
    %225 = arith.mulf %220, %224 : vector<8x32xf32>
    %226 = vector.extract_strided_slice %216 {offsets = [0, 128], sizes = [8, 32], strides = [1, 1]} : vector<8x256xf32> to vector<8x32xf32>
    %227 = vector.extract_strided_slice %216 {offsets = [0, 160], sizes = [8, 32], strides = [1, 1]} : vector<8x256xf32> to vector<8x32xf32>
    %228 = vector.extract_strided_slice %216 {offsets = [0, 192], sizes = [8, 32], strides = [1, 1]} : vector<8x256xf32> to vector<8x32xf32>
    %229 = vector.extract_strided_slice %216 {offsets = [0, 224], sizes = [8, 32], strides = [1, 1]} : vector<8x256xf32> to vector<8x32xf32>
    %230 = arith.mulf %227, %195 : vector<8x32xf32>
    %231 = arith.mulf %226, %228 : vector<8x32xf32>
    %232 = arith.addf %230, %231 : vector<8x32xf32>
    %233 = math.tanh %232 : vector<8x32xf32>
    %234 = arith.mulf %229, %233 : vector<8x32xf32>
    %c1_i32_66 = arith.constant 1 : i32
    %235 = arith.subi %c5_i32, %c1_i32_66 : i32
    %236 = arith.index_cast %235 : i32 to index
    %c0_67 = arith.constant 0 : index
    %c0_68 = arith.constant 0 : index
    %237 = vector.load %arg13[%236, %c0_67, %c0_68] : memref<8x8x32xf32, #tpu.memory_space<vmem>>, vector<1x8x32xf32>
    %238 = vector.shape_cast %237 : vector<1x8x32xf32> to vector<8x32xf32>
    %239 = vector.shape_cast %234 : vector<8x32xf32> to vector<1x8x32xf32>
    tpu.vector_store %arg13[%236, %c0_67, %c0_68], %239 {strides = array<i32>} : memref<8x8x32xf32, #tpu.memory_space<vmem>>, vector<1x8x32xf32>,
    %c6_i32 = arith.constant 6 : i32
    %240 = tpu.concatenate %225, %234 in 1 : vector<8x32xf32>, vector<8x32xf32> -> vector<8x64xf32>
    %241 = arith.index_cast %c6_i32 : i32 to index
    %c0_69 = arith.constant 0 : index
    %c0_70 = arith.constant 0 : index
    %242 = vector.load %arg12[%241, %c0_69, %c0_70] : memref<8x8x256xf32, #tpu.memory_space<vmem>>, vector<1x8x256xf32>
    %243 = vector.shape_cast %242 : vector<1x8x256xf32> to vector<8x256xf32>
    %cst_71 = arith.constant dense<0.000000e+00> : vector<8x256xf32>
    %244 = tpu.matmul %240, %12, %cst_71 {dimension_numbers = #tpu.dot_dimension_numbers<[1], [0], [0], [1], [0, 0, 1, 1], [], []>} : vector<8x64xf32>, vector<64x256xf32>, vector<8x256xf32> -> vector<8x256xf32>
    %245 = arith.addf %244, %243 : vector<8x256xf32>
    %246 = math.tanh %245 : vector<8x256xf32>
    %cst_72 = arith.constant 0.000000e+00 : f32
    %247 = vector.broadcast %cst_72 : f32 to vector<8x256xf32>
    %248 = arith.subf %247, %245 : vector<8x256xf32>
    %249 = math.exp %248 : vector<8x256xf32>
    %cst_73 = arith.constant 1.000000e+00 : f32
    %250 = vector.broadcast %cst_73 : f32 to vector<8x256xf32>
    %251 = arith.addf %250, %249 : vector<8x256xf32>
    %252 = tpu.reciprocal %251 : vector<8x256xf32> -> vector<8x256xf32>
    %253 = arith.select %24, %246, %252 : vector<8x256xi1>, vector<8x256xf32>
    %254 = vector.extract_strided_slice %253 {offsets = [0, 0], sizes = [8, 32], strides = [1, 1]} : vector<8x256xf32> to vector<8x32xf32>
    %255 = vector.extract_strided_slice %253 {offsets = [0, 32], sizes = [8, 32], strides = [1, 1]} : vector<8x256xf32> to vector<8x32xf32>
    %256 = vector.extract_strided_slice %253 {offsets = [0, 64], sizes = [8, 32], strides = [1, 1]} : vector<8x256xf32> to vector<8x32xf32>
    %257 = vector.extract_strided_slice %253 {offsets = [0, 96], sizes = [8, 32], strides = [1, 1]} : vector<8x256xf32> to vector<8x32xf32>
    %258 = arith.mulf %255, %223 : vector<8x32xf32>
    %259 = arith.mulf %254, %256 : vector<8x32xf32>
    %260 = arith.addf %258, %259 : vector<8x32xf32>
    %261 = math.tanh %260 : vector<8x32xf32>
    %262 = arith.mulf %257, %261 : vector<8x32xf32>
    %263 = vector.extract_strided_slice %253 {offsets = [0, 128], sizes = [8, 32], strides = [1, 1]} : vector<8x256xf32> to vector<8x32xf32>
    %264 = vector.extract_strided_slice %253 {offsets = [0, 160], sizes = [8, 32], strides = [1, 1]} : vector<8x256xf32> to vector<8x32xf32>
    %265 = vector.extract_strided_slice %253 {offsets = [0, 192], sizes = [8, 32], strides = [1, 1]} : vector<8x256xf32> to vector<8x32xf32>
    %266 = vector.extract_strided_slice %253 {offsets = [0, 224], sizes = [8, 32], strides = [1, 1]} : vector<8x256xf32> to vector<8x32xf32>
    %267 = arith.mulf %264, %232 : vector<8x32xf32>
    %268 = arith.mulf %263, %265 : vector<8x32xf32>
    %269 = arith.addf %267, %268 : vector<8x32xf32>
    %270 = math.tanh %269 : vector<8x32xf32>
    %271 = arith.mulf %266, %270 : vector<8x32xf32>
    %c1_i32_74 = arith.constant 1 : i32
    %272 = arith.subi %c6_i32, %c1_i32_74 : i32
    %273 = arith.index_cast %272 : i32 to index
    %c0_75 = arith.constant 0 : index
    %c0_76 = arith.constant 0 : index
    %274 = vector.load %arg13[%273, %c0_75, %c0_76] : memref<8x8x32xf32, #tpu.memory_space<vmem>>, vector<1x8x32xf32>
    %275 = vector.shape_cast %274 : vector<1x8x32xf32> to vector<8x32xf32>
    %276 = vector.shape_cast %271 : vector<8x32xf32> to vector<1x8x32xf32>
    tpu.vector_store %arg13[%273, %c0_75, %c0_76], %276 {strides = array<i32>} : memref<8x8x32xf32, #tpu.memory_space<vmem>>, vector<1x8x32xf32>,
    %c7_i32 = arith.constant 7 : i32
    %277 = tpu.concatenate %262, %271 in 1 : vector<8x32xf32>, vector<8x32xf32> -> vector<8x64xf32>
    %278 = arith.index_cast %c7_i32 : i32 to index
    %c0_77 = arith.constant 0 : index
    %c0_78 = arith.constant 0 : index
    %279 = vector.load %arg12[%278, %c0_77, %c0_78] : memref<8x8x256xf32, #tpu.memory_space<vmem>>, vector<1x8x256xf32>
    %280 = vector.shape_cast %279 : vector<1x8x256xf32> to vector<8x256xf32>
    %cst_79 = arith.constant dense<0.000000e+00> : vector<8x256xf32>
    %281 = tpu.matmul %277, %12, %cst_79 {dimension_numbers = #tpu.dot_dimension_numbers<[1], [0], [0], [1], [0, 0, 1, 1], [], []>} : vector<8x64xf32>, vector<64x256xf32>, vector<8x256xf32> -> vector<8x256xf32>
    %282 = arith.addf %281, %280 : vector<8x256xf32>
    %283 = math.tanh %282 : vector<8x256xf32>
    %cst_80 = arith.constant 0.000000e+00 : f32
    %284 = vector.broadcast %cst_80 : f32 to vector<8x256xf32>
    %285 = arith.subf %284, %282 : vector<8x256xf32>
    %286 = math.exp %285 : vector<8x256xf32>
    %cst_81 = arith.constant 1.000000e+00 : f32
    %287 = vector.broadcast %cst_81 : f32 to vector<8x256xf32>
    %288 = arith.addf %287, %286 : vector<8x256xf32>
    %289 = tpu.reciprocal %288 : vector<8x256xf32> -> vector<8x256xf32>
    %290 = arith.select %24, %283, %289 : vector<8x256xi1>, vector<8x256xf32>
    %291 = vector.extract_strided_slice %290 {offsets = [0, 0], sizes = [8, 32], strides = [1, 1]} : vector<8x256xf32> to vector<8x32xf32>
    %292 = vector.extract_strided_slice %290 {offsets = [0, 32], sizes = [8, 32], strides = [1, 1]} : vector<8x256xf32> to vector<8x32xf32>
    %293 = vector.extract_strided_slice %290 {offsets = [0, 64], sizes = [8, 32], strides = [1, 1]} : vector<8x256xf32> to vector<8x32xf32>
    %294 = vector.extract_strided_slice %290 {offsets = [0, 96], sizes = [8, 32], strides = [1, 1]} : vector<8x256xf32> to vector<8x32xf32>
    %295 = arith.mulf %292, %260 : vector<8x32xf32>
    %296 = arith.mulf %291, %293 : vector<8x32xf32>
    %297 = arith.addf %295, %296 : vector<8x32xf32>
    %298 = math.tanh %297 : vector<8x32xf32>
    %299 = arith.mulf %294, %298 : vector<8x32xf32>
    %300 = vector.extract_strided_slice %290 {offsets = [0, 128], sizes = [8, 32], strides = [1, 1]} : vector<8x256xf32> to vector<8x32xf32>
    %301 = vector.extract_strided_slice %290 {offsets = [0, 160], sizes = [8, 32], strides = [1, 1]} : vector<8x256xf32> to vector<8x32xf32>
    %302 = vector.extract_strided_slice %290 {offsets = [0, 192], sizes = [8, 32], strides = [1, 1]} : vector<8x256xf32> to vector<8x32xf32>
    %303 = vector.extract_strided_slice %290 {offsets = [0, 224], sizes = [8, 32], strides = [1, 1]} : vector<8x256xf32> to vector<8x32xf32>
    %304 = arith.mulf %301, %269 : vector<8x32xf32>
    %305 = arith.mulf %300, %302 : vector<8x32xf32>
    %306 = arith.addf %304, %305 : vector<8x32xf32>
    %307 = math.tanh %306 : vector<8x32xf32>
    %308 = arith.mulf %303, %307 : vector<8x32xf32>
    %c1_i32_82 = arith.constant 1 : i32
    %309 = arith.subi %c7_i32, %c1_i32_82 : i32
    %310 = arith.index_cast %309 : i32 to index
    %c0_83 = arith.constant 0 : index
    %c0_84 = arith.constant 0 : index
    %311 = vector.load %arg13[%310, %c0_83, %c0_84] : memref<8x8x32xf32, #tpu.memory_space<vmem>>, vector<1x8x32xf32>
    %312 = vector.shape_cast %311 : vector<1x8x32xf32> to vector<8x32xf32>
    %313 = vector.shape_cast %308 : vector<8x32xf32> to vector<1x8x32xf32>
    tpu.vector_store %arg13[%310, %c0_83, %c0_84], %313 {strides = array<i32>} : memref<8x8x32xf32, #tpu.memory_space<vmem>>, vector<1x8x32xf32>,
    %c7_i32_85 = arith.constant 7 : i32
    %314 = tpu.concatenate %299, %308 in 1 : vector<8x32xf32>, vector<8x32xf32> -> vector<8x64xf32>
    %c7 = arith.constant 7 : index
    %c0_86 = arith.constant 0 : index
    %c0_87 = arith.constant 0 : index
    %315 = vector.load %arg12[%c7, %c0_86, %c0_87] : memref<8x8x256xf32, #tpu.memory_space<vmem>>, vector<1x8x256xf32>
    %316 = vector.shape_cast %315 : vector<1x8x256xf32> to vector<8x256xf32>
    %cst_88 = arith.constant dense<0.000000e+00> : vector<8x256xf32>
    %317 = tpu.matmul %314, %12, %cst_88 {dimension_numbers = #tpu.dot_dimension_numbers<[1], [0], [0], [1], [0, 0, 1, 1], [], []>} : vector<8x64xf32>, vector<64x256xf32>, vector<8x256xf32> -> vector<8x256xf32>
    %318 = arith.addf %317, %316 : vector<8x256xf32>
    %319 = math.tanh %318 : vector<8x256xf32>
    %cst_89 = arith.constant 0.000000e+00 : f32
    %320 = vector.broadcast %cst_89 : f32 to vector<8x256xf32>
    %321 = arith.subf %320, %318 : vector<8x256xf32>
    %322 = math.exp %321 : vector<8x256xf32>
    %cst_90 = arith.constant 1.000000e+00 : f32
    %323 = vector.broadcast %cst_90 : f32 to vector<8x256xf32>
    %324 = arith.addf %323, %322 : vector<8x256xf32>
    %325 = tpu.reciprocal %324 : vector<8x256xf32> -> vector<8x256xf32>
    %326 = arith.select %24, %319, %325 : vector<8x256xi1>, vector<8x256xf32>
    %327 = vector.extract_strided_slice %326 {offsets = [0, 128], sizes = [8, 32], strides = [1, 1]} : vector<8x256xf32> to vector<8x32xf32>
    %328 = vector.extract_strided_slice %326 {offsets = [0, 160], sizes = [8, 32], strides = [1, 1]} : vector<8x256xf32> to vector<8x32xf32>
    %329 = vector.extract_strided_slice %326 {offsets = [0, 192], sizes = [8, 32], strides = [1, 1]} : vector<8x256xf32> to vector<8x32xf32>
    %330 = vector.extract_strided_slice %326 {offsets = [0, 224], sizes = [8, 32], strides = [1, 1]} : vector<8x256xf32> to vector<8x32xf32>
    %331 = arith.mulf %328, %306 : vector<8x32xf32>
    %332 = arith.mulf %327, %329 : vector<8x32xf32>
    %333 = arith.addf %331, %332 : vector<8x32xf32>
    %334 = math.tanh %333 : vector<8x32xf32>
    %335 = arith.mulf %330, %334 : vector<8x32xf32>
    %c7_91 = arith.constant 7 : index
    %c0_92 = arith.constant 0 : index
    %c0_93 = arith.constant 0 : index
    %336 = vector.load %arg13[%c7_91, %c0_92, %c0_93] : memref<8x8x32xf32, #tpu.memory_space<vmem>>, vector<1x8x32xf32>
    %337 = vector.shape_cast %336 : vector<1x8x32xf32> to vector<8x32xf32>
    %338 = vector.shape_cast %335 : vector<8x32xf32> to vector<1x8x32xf32>
    tpu.vector_store %arg13[%c7_91, %c0_92, %c0_93], %338 {strides = array<i32>} : memref<8x8x32xf32, #tpu.memory_space<vmem>>, vector<1x8x32xf32>,
    %c0_94 = arith.constant 0 : index
    %c0_95 = arith.constant 0 : index
    %c0_96 = arith.constant 0 : index
    %339 = vector.load %arg10[%c0_94, %c0_95, %c0_96] : memref<2x8x32xf32, #tpu.memory_space<vmem>>, vector<1x8x32xf32>
    %340 = vector.shape_cast %339 : vector<1x8x32xf32> to vector<8x32xf32>
    %341 = vector.shape_cast %299 : vector<8x32xf32> to vector<1x8x32xf32>
    tpu.vector_store %arg10[%c0_94, %c0_95, %c0_96], %341 {strides = array<i32>} : memref<2x8x32xf32, #tpu.memory_space<vmem>>, vector<1x8x32xf32>,
    %c1_97 = arith.constant 1 : index
    %c0_98 = arith.constant 0 : index
    %c0_99 = arith.constant 0 : index
    %342 = vector.load %arg10[%c1_97, %c0_98, %c0_99] : memref<2x8x32xf32, #tpu.memory_space<vmem>>, vector<1x8x32xf32>
    %343 = vector.shape_cast %342 : vector<1x8x32xf32> to vector<8x32xf32>
    %344 = vector.shape_cast %335 : vector<8x32xf32> to vector<1x8x32xf32>
    tpu.vector_store %arg10[%c1_97, %c0_98, %c0_99], %344 {strides = array<i32>} : memref<2x8x32xf32, #tpu.memory_space<vmem>>, vector<1x8x32xf32>,
    %c0_100 = arith.constant 0 : index
    %c0_101 = arith.constant 0 : index
    %c0_102 = arith.constant 0 : index
    %345 = vector.load %arg11[%c0_100, %c0_101, %c0_102] : memref<2x8x32xf32, #tpu.memory_space<vmem>>, vector<1x8x32xf32>
    %346 = vector.shape_cast %345 : vector<1x8x32xf32> to vector<8x32xf32>
    %347 = vector.shape_cast %297 : vector<8x32xf32> to vector<1x8x32xf32>
    tpu.vector_store %arg11[%c0_100, %c0_101, %c0_102], %347 {strides = array<i32>} : memref<2x8x32xf32, #tpu.memory_space<vmem>>, vector<1x8x32xf32>,
    %c1_103 = arith.constant 1 : index
    %c0_104 = arith.constant 0 : index
    %c0_105 = arith.constant 0 : index
    %348 = vector.load %arg11[%c1_103, %c0_104, %c0_105] : memref<2x8x32xf32, #tpu.memory_space<vmem>>, vector<1x8x32xf32>
    %349 = vector.shape_cast %348 : vector<1x8x32xf32> to vector<8x32xf32>
    %350 = vector.shape_cast %333 : vector<8x32xf32> to vector<1x8x32xf32>
    tpu.vector_store %arg11[%c1_103, %c0_104, %c0_105], %350 {strides = array<i32>} : memref<2x8x32xf32, #tpu.memory_space<vmem>>, vector<1x8x32xf32>,
    %c0_106 = arith.constant 0 : index
    %c0_107 = arith.constant 0 : index
    %c0_108 = arith.constant 0 : index
    %351 = vector.load %arg13[%c0_106, %c0_107, %c0_108] : memref<8x8x32xf32, #tpu.memory_space<vmem>>, vector<8x8x32xf32>
    %352 = vector.shape_cast %351 : vector<8x8x32xf32> to vector<64x32xf32>
    %c0_109 = arith.constant 0 : index
    %c0_110 = arith.constant 0 : index
    %353 = vector.load %arg7[%c0_109, %c0_110] : memref<32x128xf32, #tpu.memory_space<vmem>>, vector<32x128xf32>
    %cst_111 = arith.constant dense<0.000000e+00> : vector<64x128xf32>
    %354 = tpu.matmul %352, %353, %cst_111 {dimension_numbers = #tpu.dot_dimension_numbers<[1], [0], [0], [1], [0, 0, 1, 1], [], []>} : vector<64x32xf32>, vector<32x128xf32>, vector<64x128xf32> -> vector<64x128xf32>
    %c0_112 = arith.constant 0 : index
    %c0_113 = arith.constant 0 : index
    %355 = vector.load %arg8[%c0_112, %c0_113] : memref<1x128xf32, #tpu.memory_space<vmem>>, vector<1x128xf32>
    %356 = vector.broadcast %355 : vector<1x128xf32> to vector<64x128xf32>
    %357 = arith.addf %354, %356 : vector<64x128xf32>
    %358 = vector.shape_cast %357 : vector<64x128xf32> to vector<8x8x128xf32>
    %c0_114 = arith.constant 0 : index
    %c0_115 = arith.constant 0 : index
    %c0_116 = arith.constant 0 : index
    %359 = vector.load %arg9[%c0_114, %c0_115, %c0_116] : memref<8x8x128xf32, #tpu.memory_space<vmem>>, vector<8x8x128xf32>
    tpu.vector_store %arg9[%c0_114, %c0_115, %c0_116], %358 {strides = array<i32>} : memref<8x8x128xf32, #tpu.memory_space<vmem>>, vector<8x8x128xf32>,
    return
  }
}

</mosaic_0001>

<bundles_post_ra>
// kernel: shayari_lstm_forward.1
= control target key start
LH: loop header
LB: loop body
LE: loop exit
PB: predicated region body
PF: predicated region fallthrough
CT: control target
= control target key end

     0   :  { %s1559_s21 = smov 32   ;;  %vm51_vm0 = vcmask 261120   ;;  %vm182_vm1 = vcmask 523264   ;;  %v153_v31 = vlaneseq  ;;  %s2255_s5 = inlined_call_operand.vmem [shape: f32[2,8,32], index: 5, kind: input, shape index: {}]   ;;  %s2256_s1 = inlined_call_operand.vmem [shape: f32[32,128], index: 1, kind: input, shape index: {}]   ;;  %s2257_s0 = inlined_call_operand.vmem [shape: f32[64,32], index: 0, kind: input, shape index: {}]   ;;  %s2258_s3 = inlined_call_operand.vmem [shape: f32[64,256], index: 3, kind: input, shape index: {}]   ;;  %s2259_s2 = inlined_call_operand.vmem [shape: f32[1,128], index: 2, kind: input, shape index: {}]   ;;  %s2260_s6 = inlined_call_operand.vmem [shape: f32[2,8,32], index: 6, kind: input, shape index: {}]   ;;  %s2261_s4 = inlined_call_operand.vmem [shape: f32[1,128], index: 4, kind: input, shape index: {}]   ;;  %s2262_s8 = inlined_call_operand.vmem [shape: f32[1,128], index: 8, kind: input, shape index: {}]   ;;  %s2263_s7 = inlined_call_operand.vmem [shape: f32[32,128], index: 7, kind: input, shape index: {}]   ;;  %s2264_s10 = inlined_call_operand.vmem [shape: f32[2,8,32], index: 10, kind: output, shape index: {1}]   ;;  %s2265_s11 = inlined_call_operand.vmem [shape: f32[2,8,32], index: 11, kind: output, shape index: {2}]   ;;  %s2266_s9 = inlined_call_operand.vmem [shape: f32[8,8,128], index: 9, kind: output, shape index: {0}]  }
   0x1   :  { %v1383_v0 = vld [vmem:[%s2255_s5 + $0x8] sm:$0xff]  ;;  %v46_v1 = vld [vmem:[%s2256_s1 + $0x18] sm:$0xff]  ;;  %v45_v2 = vld [vmem:[%s2256_s1 + $0x10] sm:$0xff] }
   0x2   :  { %177 = vrot.lane.b32.xlu0 %v1383_v0, %s1559_s21  ;;  %1411 = vmatpush.msra.mxu1 %v46_v1  ;;  %v44_v3 = vld [vmem:[%s2256_s1 + $0x8] sm:$0xff]  ;;  %v43_v4 = vld [vmem:[%s2256_s1] sm:$0xff]  ;;  %v37_v5 = vld [vmem:[%s2257_s0 + $0x10] sm:$0xff]  ;;  %v1736_v33 = vand.u32 127, %v153_v31 }
   0x3   :  { %88 = vmatpush.msra.mxu0 %v46_v1  ;;  %1412 = vmatpush.msra.mxu2 %v46_v1  ;;  %v1644_v6 = vld [vmem:[%s2258_s3 + $0x70] sm:$0xff]  ;;  %v1650_v7 = vld [vmem:[%s2258_s3 + $0x60] sm:$0xff]  ;;  %v38_v10 = vld [vmem:[%s2257_s0 + $0x18] sm:$0xff] }
   0x4   :  { %1414 = vmatpush.msra.mxu1 %v45_v2  ;;  %1413 = vmatpush.msra.mxu3 %v46_v1  ;;  %v1656_v8 = vld [vmem:[%s2258_s3 + $0x50] sm:$0xff]  ;;  %v1663_v9 = vld [vmem:[%s2258_s3 + $0x40] sm:$0xff]  ;;  %vm156_vm2 = vcmp.ge.s32.totalorder %v1736_v33, 64  ;;  %vm158_vm3 = vcmp.lt.s32.totalorder %v1736_v33, 96  ;;  %v1758_v54 = vld [vmem:[%s2258_s3 + $0x78] sm:$0xff] }
   0x5   :  { %89 = vmatpush.msra.mxu0 %v45_v2  ;;  %1415 = vmatpush.msra.mxu2 %v45_v2  ;;  %v1673_v11 = vld [vmem:[%s2258_s3 + $0x30] sm:$0xff]  ;;  %v1681_v12 = vld [vmem:[%s2258_s3 + $0x20] sm:$0xff]  ;;  %vm1740_vm5 = vmand %vm156_vm2, %vm158_vm3 }
   0x6   :  { %1417 = vmatpush.msra.mxu1 %v44_v3  ;;  %1416 = vmatpush.msra.mxu3 %v45_v2  ;;  %v1688_v13 = vld [vmem:[%s2258_s3 + $0x10] sm:$0xff]  ;;  %v35_v14 = vld [vmem:[%s2257_s0] sm:$0xff]  ;;  %v1765_v55 = vld [vmem:[%s2258_s3 + $0x68] sm:$0xff] }
   0x7   :  { %90 = vmatpush.msra.mxu0 %v44_v3  ;;  %1418 = vmatpush.msra.mxu2 %v44_v3  ;;  %v1702_v15 = vld [vmem:[%s2258_s3] sm:$0xff]  ;;  %v1770_v56 = vld [vmem:[%s2258_s3 + $0x58] sm:$0xff]  ;;  %v1782_v58 = vld [vmem:[%s2258_s3 + $0x48] sm:$0xff] }
   0x8   :  { %1420 = vmatpush.msra.mxu1 %v43_v4  ;;  %1419 = vmatpush.msra.mxu3 %v44_v3  ;;  %v173_v16 = vld [vmem:[%s2260_s6] sm:$0xff]  ;;  %v42_v57 = vld [vmem:[%s2257_s0 + $0x38] sm:$0xff]  ;;  %v40_v59 = vld [vmem:[%s2257_s0 + $0x28] sm:$0xff] }
   0x9   :  { %1377 = vmatmul.msk.f32.vlgmr.msra.gmra.mxu1 %vm51_vm0, %v37_v5  ;;  %91 = vmatpush.msra.mxu0 %v43_v4  ;;  %v170_v17 = vld [vmem:[%s2255_s5] sm:$0xff]  ;;  %s1560_s5 = smov 64   ;;  %v1794_v60 = vld [vmem:[%s2258_s3 + $0x38] sm:$0xff]  ;;  %v1803_v61 = vld [vmem:[%s2258_s3 + $0x28] sm:$0xff] }
   0xa   :  { %194 = vmatpush.msrb.mxu1 %v1644_v6  ;;  %1421 = vmatpush.msra.mxu2 %v43_v4  ;;  %v1733_v23 = vld [vmem:[%s2259_s2] ss:$0 sm:$0xff]  ;;  %v1812_v62 = vld [vmem:[%s2258_s3 + $0x18] sm:$0xff]  ;;  %v41_v63 = vld [vmem:[%s2257_s0 + $0x30] sm:$0xff] }
   0xb   :  { %1422 = vmatpush.msra.mxu3 %v43_v4  ;;  %1375 = vmatmul.msk.f32.vlgmr.msra.gmra.mxu0 %vm51_vm0, %v35_v14  ;;  %v39_v53 = vld [vmem:[%s2257_s0 + $0x20] sm:$0xff]  ;;  %v1835_v2 = vld [vmem:[%s2258_s3 + $0x8] sm:$0xff] }
   0xc   :  { %266 = vmatpush.msrb.mxu2 %v1644_v6  ;;  %195 = vmatpush.msrb.mxu1 %v1650_v7  ;;  %v36_v3 = vld [vmem:[%s2257_s0 + $0x8] sm:$0xff] }
   0xd   :  { %227 = vrot.lane.b32.xlu1 %v173_v16, %s1559_s21  ;;  %1379 = vmatmul.msk.f32.vlgmr.msra.gmra.mxu2 %vm51_vm0, %v39_v53  ;;  %v1384_v4 = vld [vmem:[%s2260_s6 + $0x8] sm:$0xff] }
   0xe   :  { %267 = vmatpush.msrb.mxu2 %v1650_v7  ;;  %196 = vmatpush.msrb.mxu1 %v1656_v8 }
   0xf   :  { %286 = vmatpush.msrb.mxu3 %v1758_v54  ;;  %959 = vmatpush.msrb.mxu0 %v1758_v54 }
  0x10   :  { %268 = vmatpush.msrb.mxu2 %v1656_v8  ;;  %197 = vmatpush.msrb.mxu1 %v1663_v9 }
  0x11   :  { %1378 = vmatmul.msk.f32.gmra.mxu1 %vm51_vm0, %v38_v10  ;;  %287 = vmatpush.msrb.mxu3 %v1765_v55 }
  0x12   :  { %269 = vmatpush.msrb.mxu2 %v1663_v9  ;;  %198 = vmatpush.msrb.mxu1 %v1673_v11 }
  0x13   :  { %1382 = vmatmul.msk.f32.vlgmr.msra.gmra.mxu3 %vm51_vm0, %v42_v57  ;;  %960 = vmatpush.msrb.mxu0 %v1765_v55 }
  0x14   :  { %270 = vmatpush.msrb.mxu2 %v1673_v11  ;;  %199 = vmatpush.msrb.mxu1 %v1681_v12 }
  0x15   :  { %288 = vmatpush.msrb.mxu3 %v1770_v56  ;;  %961 = vmatpush.msrb.mxu0 %v1770_v56 }
  0x16   :  { %271 = vmatpush.msrb.mxu2 %v1681_v12  ;;  %200 = vmatpush.msrb.mxu1 %v1688_v13 }
  0x17   :  { %289 = vmatpush.msrb.mxu3 %v1782_v58  ;;  %1380 = vmatmul.msk.f32.gmra.mxu2 %vm51_vm0, %v40_v59 }
  0x18   :  { %272 = vmatpush.msrb.mxu2 %v1688_v13  ;;  %201 = vmatpush.msrb.mxu1 %v1702_v15 }
  0x19   :  { %290 = vmatpush.msrb.mxu3 %v1794_v60  ;;  %962 = vmatpush.msrb.mxu0 %v1782_v58 }
  0x1a   :  { %273 = vmatpush.msrb.mxu2 %v1702_v15  ;;  %403 = vmatpush.msra.mxu1 %v1644_v6 }
  0x1b   :  { %291 = vmatpush.msrb.mxu3 %v1803_v61  ;;  %963 = vmatpush.msrb.mxu0 %v1794_v60 }
  0x1c   :  { %404 = vmatpush.msra.mxu1 %v1650_v7  ;;  %423 = vmatpush.msra.mxu2 %v1758_v54 }
  0x1d   :  { %292 = vmatpush.msrb.mxu3 %v1812_v62  ;;  %964 = vmatpush.msrb.mxu0 %v1803_v61 }
  0x1e   :  { %405 = vmatpush.msra.mxu1 %v1656_v8  ;;  %424 = vmatpush.msra.mxu2 %v1765_v55 }
  0x1f   :  { %1381 = vmatmul.msk.f32.gmra.mxu2 %vm51_vm0, %v41_v63  ;;  %965 = vmatpush.msrb.mxu0 %v1812_v62 }
  0x20   :  { %406 = vmatpush.msra.mxu1 %v1663_v9  ;;  %425 = vmatpush.msra.mxu2 %v1770_v56 }
  0x21   :  { %293 = vmatpush.msrb.mxu3 %v1835_v2  ;;  %1376 = vmatmul.msk.f32.gmra.mxu0 %vm51_vm0, %v36_v3 }
  0x22   :  { %407 = vmatpush.msra.mxu1 %v1673_v11  ;;  %426 = vmatpush.msra.mxu2 %v1782_v58 }
  0x23   :  { %537 = vmatpush.msra.mxu3 %v1644_v6  ;;  %966 = vmatpush.msrb.mxu0 %v1835_v2 }
  0x24   :  { %408 = vmatpush.msra.mxu1 %v1681_v12  ;;  %427 = vmatpush.msra.mxu2 %v1794_v60 }
  0x25   :  { %538 = vmatpush.msra.mxu3 %v1650_v7 }
  0x26   :  { %409 = vmatpush.msra.mxu1 %v1688_v13  ;;  %428 = vmatpush.msra.mxu2 %v1803_v61 }
  0x27   :  { %539 = vmatpush.msra.mxu3 %v1656_v8 }
  0x28   :  { %410 = vmatpush.msra.mxu1 %v1702_v15  ;;  %429 = vmatpush.msra.mxu2 %v1812_v62 }
  0x29   :  { %540 = vmatpush.msra.mxu3 %v1663_v9 }
  0x2a   :  { %430 = vmatpush.msra.mxu2 %v1835_v2 }
  0x2b   :  { %541 = vmatpush.msra.mxu3 %v1673_v11 }
  0x2d   :  { %542 = vmatpush.msra.mxu3 %v1681_v12 }
  0x2f   :  { %543 = vmatpush.msra.mxu3 %v1688_v13 }
  0x31   :  { %544 = vmatpush.msra.mxu3 %v1702_v15 }
  0x74   :  { %v1721_v18 = vpop.permute.xlu0 %177 }
  0x75   :  { %v180_v19 = vsel %vm51_vm0, %v170_v17, %v1721_v18 }
  0x76   :  { %1385 = vmatmul.msk.f32.vlgmr.msrb.gmra.mxu1 %vm182_vm1, %v180_v19 }
  0x77   :  { %557 = vmatpush.msrb.mxu1 %v1758_v54 }
  0x79   :  { %558 = vmatpush.msrb.mxu1 %v1765_v55 }
  0x7b   :  { %559 = vmatpush.msrb.mxu1 %v1770_v56 }
  0x7d   :  { %560 = vmatpush.msrb.mxu1 %v1782_v58 }
  0x7f   :  { %v228_v48 = vpop.permute.xlu1 %227  ;;  %561 = vmatpush.msrb.mxu1 %v1794_v60 }
  0x81   :  { %562 = vmatpush.msrb.mxu1 %v1803_v61 }
  0x83   :  { %563 = vmatpush.msrb.mxu1 %v1812_v62 }
  0x85   :  { %564 = vmatpush.msrb.mxu1 %v1835_v2 }
  0x86   :  { %v1726_v20 = vpop.f32.mrf.mxu1 }
  0x88   :  { %v93_v22 = vpop.f32.mrf.mxu0 }
  0x89   :  { %v94_v24 = vadd.f32 %v1733_v23, %v93_v22 }
  0x8e   :  { %v1728_v21 = vpop.f32.mrf.mxu1 }
  0x90   :  { %v1877_v14 = vpop.f32.mrf.mxu2 }
  0x9a   :  { %v1879_v16 = vpop.f32.mrf.mxu2 }
  0x9e   :  { %v96_v19 = vpop.f32.mrf.mxu0 }
  0x9f   :  { %v97_v22 = vadd.f32 %v1733_v23, %v96_v19 }
  0xa2   :  { %v1881_v17 = vpop.f32.mrf.mxu2 }
  0xf3   :  { %v203_v25 = vpop.f32.mrf.mxu1 }
  0xf4   :  { %v204_v26 = vadd.f32 %v203_v25, %v94_v24  ;;  %v1889_v24 = vld [vmem:[%s2261_s4] ss:$0 sm:$0xff] }
  0xf6   :  { %v207_v27 = vsub.f32 0.0, %v204_v26 }
  0xf8   :  { %v208_v28 = vmul.f32 1.442695, %v207_v27 }
  0xfa   :  { %1429 = vpow2.f32 %v208_v28 }
 0x100   :  { %v1430_v29 = vpop.eup %1429 }
 0x101   :  { %v210_v30 = vadd.f32 1.0, %v1430_v29 }
 0x103   :  { %1431 = vrcp.f32 %v210_v30  ;;  %v222_v36 = vand.u32 2147483648, %v210_v30  ;;  %v220_v38 = vand.u32 2147483647, %v210_v30  ;;  %vm216_vm6 = vweird.f32 %v210_v30 }
 0x104   :  { %1433 = vtanh.f32 %v204_v26 }
 0x105   :  { %v223_v41 = vor.u32 1.1754944e-38, %v222_v36  ;;  %vm221_vm8 = vcmp.eq.f32.partialorder %v220_v38, 8.507059e+37  ;;  %v155_v38 = vadd.s32 128, %v1736_v33 }
 0x107   :  { %vm163_vm9 = vcmp.ge.s32.totalorder %v155_v38, 192  ;;  %vm165_vm10 = vcmp.lt.s32.totalorder %v155_v38, 224 }
 0x108   :  { %vm1893_vm13 = vmand %vm163_vm9, %vm165_vm10 }
 0x109   :  { %v1432_v32 = vpop.eup %1431 }
 0x10a   :  { %v212_v34 = vmul.f32 %v1432_v32, %v210_v30  ;;  %vm217_vm4 = vweird.f32 %v1432_v32  ;;  %v1434_v43 = vpop.eup %1433 }
 0x10b   :  { %vm218_vm7 = vmor %vm216_vm6, %vm217_vm4 }
 0x10c   :  { %v213_v35 = vsub.f32 1.0, %v212_v34 }
 0x10e   :  { %v214_v37 = vmul.f32 %v1432_v32, %v213_v35 }
 0x110   :  { %v215_v40 = vadd.f32 %v1432_v32, %v214_v37 }
 0x112   :  { %v219_v42 = vsel %vm218_vm7, %v1432_v32, %v215_v40 }
 0x113   :  { %v224_v44 = vsel %vm221_vm8, %v223_v41, %v219_v42 }
 0x114   :  { %v225_v45 = vsel %vm1740_vm5, %v1434_v43, %v224_v44 }
 0x115   :  { %232 = vrot.lane.b32.xlu0 %v225_v45, %s1560_s5  ;;  %v230_v49 = vmul.f32 %v228_v48, %v225_v45 }
 0x187   :  { %v233_v46 = vpop.permute.xlu0 %232 }
 0x188   :  { %v235_v47 = vmul.f32 %v233_v46, %v225_v45 }
 0x18a   :  { %237 = vrot.lane.b32.xlu1 %v235_v47, %s1559_s21 }
 0x1fc   :  { %v238_v50 = vpop.permute.xlu1 %237 }
 0x1fd   :  { %v1748_v51 = vadd.f32 %v238_v50, %v230_v49 }
 0x1ff   :  { %1435 = vtanh.f32 %v1748_v51 }
 0x205   :  { %v1436_v52 = vpop.eup %1435 }
 0x206   :  { %243 = vrot.lane.b32.xlu2 %v1436_v52, %s1560_s5 }
 0x260   :  { %v244_v0 = vpop.permute.xlu2 %243 }
 0x261   :  { %v246_v1 = vmul.f32 %v244_v0, %v225_v45 }
 0x263   :  { %248 = vrot.lane.b32.xlu2 %v246_v1, %s1559_s21 }
 0x26b   :  { %356 = vrot.lane.b32.xlu2 %v1384_v4, %s1559_s21 }
 0x2bd   :  { %v249_v5 = vpop.permute.xlu2 %248 }
 0x2be   :  { %v251_v10 = vsel %vm51_vm0, %v249_v5, %v1721_v18  ;;  %v1883_v18 = vpop.f32.mrf.mxu3 }
 0x2bf   :  { %1386 = vmatmul.msk.f32.vlgmr.msrb.gmra.mxu2 %vm182_vm1, %v251_v10  ;;  %1387 = vmatmul.msk.f32.vlgmr.msrb.gmra.mxu3 %vm182_vm1, %v251_v10 }
 0x2c0   :  { %671 = vmatpush.msrb.mxu2 %v1644_v6  ;;  %691 = vmatpush.msrb.mxu3 %v1758_v54 }
 0x2c2   :  { %672 = vmatpush.msrb.mxu2 %v1650_v7  ;;  %692 = vmatpush.msrb.mxu3 %v1765_v55 }
 0x2c4   :  { %673 = vmatpush.msrb.mxu2 %v1656_v8  ;;  %693 = vmatpush.msrb.mxu3 %v1770_v56 }
 0x2c6   :  { %674 = vmatpush.msrb.mxu2 %v1663_v9  ;;  %694 = vmatpush.msrb.mxu3 %v1782_v58 }
 0x2c8   :  { %675 = vmatpush.msrb.mxu2 %v1673_v11  ;;  %695 = vmatpush.msrb.mxu3 %v1794_v60 }
 0x2ca   :  { %676 = vmatpush.msrb.mxu2 %v1681_v12  ;;  %696 = vmatpush.msrb.mxu3 %v1803_v61 }
 0x2cc   :  { %677 = vmatpush.msrb.mxu2 %v1688_v13  ;;  %697 = vmatpush.msrb.mxu3 %v1812_v62 }
 0x2ce   :  { %678 = vmatpush.msrb.mxu2 %v1702_v15  ;;  %698 = vmatpush.msrb.mxu3 %v1835_v2 }
 0x342   :  { %v275_v25 = vpop.f32.mrf.mxu2  ;;  %v295_v26 = vpop.f32.mrf.mxu3 }
 0x343   :  { %v276_v27 = vadd.f32 %v275_v25, %v97_v22  ;;  %v296_v28 = vadd.f32 %v1889_v24, %v295_v26 }
 0x345   :  { %v300_v29 = vsub.f32 0.0, %v276_v27  ;;  %v301_v30 = vsub.f32 0.0, %v296_v28 }
 0x347   :  { %v302_v31 = vmul.f32 1.442695, %v300_v29  ;;  %v304_v32 = vmul.f32 1.442695, %v301_v30  ;;  %v357_v29 = vpop.permute.xlu2 %356 }
 0x349   :  { %1437 = vpow2.f32 %v302_v31 }
 0x34a   :  { %1439 = vpow2.f32 %v304_v32 }
 0x34f   :  { %v1438_v34 = vpop.eup %1437 }
 0x350   :  { %v1440_v35 = vpop.eup %1439  ;;  %v306_v36 = vadd.f32 1.0, %v1438_v34 }
 0x351   :  { %v307_v37 = vadd.f32 1.0, %v1440_v35 }
 0x352   :  { %1441 = vrcp.f32 %v306_v36  ;;  %v319_v46 = vand.u32 2147483648, %v306_v36  ;;  %v317_v49 = vand.u32 2147483647, %v306_v36  ;;  %vm313_vm14 = vweird.f32 %v306_v36 }
 0x353   :  { %1443 = vrcp.f32 %v307_v37  ;;  %v333_v47 = vand.u32 2147483648, %v307_v37  ;;  %v331_v52 = vand.u32 2147483647, %v307_v37  ;;  %vm327_vm15 = vweird.f32 %v307_v37 }
 0x354   :  { %1445 = vtanh.f32 %v276_v27  ;;  %v320_v59 = vor.u32 1.1754944e-38, %v319_v46  ;;  %vm318_vm4 = vcmp.eq.f32.partialorder %v317_v49, 8.507059e+37  ;;  %v100_v46 = vadd.f32 %v1733_v23, %v1726_v20 }
 0x355   :  { %1447 = vtanh.f32 %v296_v28  ;;  %v334_v0 = vor.u32 1.1754944e-38, %v333_v47  ;;  %vm332_vm6 = vcmp.eq.f32.partialorder %v331_v52, 8.507059e+37 }
 0x358   :  { %v1442_v40 = vpop.eup %1441 }
 0x359   :  { %v1444_v41 = vpop.eup %1443  ;;  %v309_v42 = vmul.f32 %v1442_v40, %v306_v36  ;;  %vm314_vm11 = vweird.f32 %v1442_v40 }
 0x35a   :  { %v323_v43 = vmul.f32 %v1444_v41, %v307_v37  ;;  %vm328_vm12 = vweird.f32 %v1444_v41  ;;  %vm315_vm2 = vmor %vm313_vm14, %vm314_vm11  ;;  %v1446_v63 = vpop.eup %1445 }
 0x35b   :  { %v310_v44 = vsub.f32 1.0, %v309_v42  ;;  %vm329_vm3 = vmor %vm327_vm15, %vm328_vm12  ;;  %v1448_v3 = vpop.eup %1447 }
 0x35c   :  { %v324_v45 = vsub.f32 1.0, %v323_v43 }
 0x35d   :  { %v311_v48 = vmul.f32 %v1442_v40, %v310_v44 }
 0x35e   :  { %v325_v50 = vmul.f32 %v1444_v41, %v324_v45 }
 0x35f   :  { %v312_v53 = vadd.f32 %v1442_v40, %v311_v48 }
 0x360   :  { %v326_v57 = vadd.f32 %v1444_v41, %v325_v50 }
 0x361   :  { %v316_v1 = vsel %vm315_vm2, %v1442_v40, %v312_v53 }
 0x362   :  { %v330_v4 = vsel %vm329_vm3, %v1444_v41, %v326_v57  ;;  %v321_v5 = vsel %vm318_vm4, %v320_v59, %v316_v1 }
 0x363   :  { %v335_v10 = vsel %vm332_vm6, %v334_v0, %v330_v4  ;;  %v336_v19 = vsel %vm1740_vm5, %v1446_v63, %v321_v5 }
 0x364   :  { %v337_v22 = vsel %vm1893_vm13, %v1448_v3, %v335_v10  ;;  %340 = vrot.lane.b32.xlu0 %v336_v19, %s1560_s5  ;;  %v338_v30 = vmul.f32 %v336_v19, %v1748_v51 }
 0x365   :  { %361 = vrot.lane.b32.xlu1 %v337_v22, %s1560_s5  ;;  %v359_v31 = vmul.f32 %v357_v29, %v337_v22 }
 0x3d6   :  { %v341_v25 = vpop.permute.xlu0 %340 }
 0x3d7   :  { %v362_v26 = vpop.permute.xlu1 %361  ;;  %v343_v27 = vmul.f32 %v341_v25, %v336_v19 }
 0x3d8   :  { %v364_v28 = vmul.f32 %v362_v26, %v337_v22 }
 0x3d9   :  { %345 = vrot.lane.b32.xlu0 %v343_v27, %s1559_s21 }
 0x3da   :  { %366 = vrot.lane.b32.xlu1 %v364_v28, %s1559_s21 }
 0x44b   :  { %v346_v32 = vpop.permute.xlu0 %345 }
 0x44c   :  { %v367_v34 = vpop.permute.xlu1 %366  ;;  %v1906_v35 = vadd.f32 %v346_v32, %v338_v30 }
 0x44d   :  { %v1908_v36 = vadd.f32 %v367_v34, %v359_v31 }
 0x44e   :  { %1449 = vtanh.f32 %v1906_v35 }
 0x44f   :  { %1451 = vtanh.f32 %v1908_v36 }
 0x454   :  { %v1450_v37 = vpop.eup %1449 }
 0x455   :  { %v1452_v38 = vpop.eup %1451  ;;  %351 = vrot.lane.b32.xlu2 %v1450_v37, %s1560_s5 }
 0x456   :  { %372 = vrot.lane.b32.xlu0 %v1452_v38, %s1560_s5 }
 0x4af   :  { %v352_v40 = vpop.permute.xlu2 %351 }
 0x4b0   :  { %v354_v41 = vmul.f32 %v352_v40, %v336_v19 }
 0x4b2   :  { %382 = vrot.lane.b32.xlu1 %v354_v41, %s1559_s21 }
 0x4c8   :  { %v373_v51 = vpop.permute.xlu0 %372 }
 0x4c9   :  { %v1915_v42 = vmul.f32 %v373_v51, %v337_v22 }
 0x4cb   :  { %385 = vrot.lane.b32.xlu2 %v1915_v42, %s1560_s5 }
 0x524   :  { %v383_v43 = vpop.permute.xlu1 %382 }
 0x525   :  { %v386_v44 = vpop.permute.xlu2 %385 }
 0x526   :  { %v388_v45 = vsel %vm51_vm0, %v383_v43, %v386_v44 }
 0x527   :  { %1388 = vmatmul.msk.f32.vlgmr.msra.gmra.mxu1 %vm182_vm1, %v388_v45  ;;  %1389 = vmatmul.msk.f32.vlgmr.msra.gmra.mxu2 %vm182_vm1, %v388_v45 }
 0x528   :  { %805 = vmatpush.msra.mxu1 %v1644_v6  ;;  %825 = vmatpush.msra.mxu2 %v1758_v54 }
 0x52a   :  { %806 = vmatpush.msra.mxu1 %v1650_v7  ;;  %826 = vmatpush.msra.mxu2 %v1765_v55 }
 0x52c   :  { %807 = vmatpush.msra.mxu1 %v1656_v8  ;;  %827 = vmatpush.msra.mxu2 %v1770_v56 }
 0x52e   :  { %808 = vmatpush.msra.mxu1 %v1663_v9  ;;  %828 = vmatpush.msra.mxu2 %v1782_v58 }
 0x530   :  { %809 = vmatpush.msra.mxu1 %v1673_v11  ;;  %829 = vmatpush.msra.mxu2 %v1794_v60 }
 0x532   :  { %810 = vmatpush.msra.mxu1 %v1681_v12  ;;  %830 = vmatpush.msra.mxu2 %v1803_v61 }
 0x534   :  { %811 = vmatpush.msra.mxu1 %v1688_v13  ;;  %831 = vmatpush.msra.mxu2 %v1812_v62 }
 0x536   :  { %812 = vmatpush.msra.mxu1 %v1702_v15  ;;  %832 = vmatpush.msra.mxu2 %v1835_v2 }
 0x5a4   :  { %v412_v47 = vpop.f32.mrf.mxu1 }
 0x5a5   :  { %v413_v48 = vadd.f32 %v412_v47, %v100_v46 }
 0x5a7   :  { %v437_v49 = vsub.f32 0.0, %v413_v48 }
 0x5a9   :  { %v439_v50 = vmul.f32 1.442695, %v437_v49 }
 0x5aa   :  { %v432_v52 = vpop.f32.mrf.mxu2 }
 0x5ab   :  { %1453 = vpow2.f32 %v439_v50  ;;  %v433_v53 = vadd.f32 %v1889_v24, %v432_v52 }
 0x5ad   :  { %v438_v57 = vsub.f32 0.0, %v433_v53 }
 0x5af   :  { %v441_v59 = vmul.f32 1.442695, %v438_v57 }
 0x5b1   :  { %v1454_v63 = vpop.eup %1453  ;;  %1455 = vpow2.f32 %v441_v59 }
 0x5b2   :  { %v443_v0 = vadd.f32 1.0, %v1454_v63 }
 0x5b4   :  { %1457 = vrcp.f32 %v443_v0  ;;  %v456_v10 = vand.u32 2147483648, %v443_v0  ;;  %v454_v22 = vand.u32 2147483647, %v443_v0  ;;  %vm450_vm8 = vweird.f32 %v443_v0 }
 0x5b6   :  { %v457_v28 = vor.u32 1.1754944e-38, %v456_v10  ;;  %vm455_vm10 = vcmp.eq.f32.partialorder %v454_v22, 8.507059e+37 }
 0x5b7   :  { %v1456_v1 = vpop.eup %1455 }
 0x5b8   :  { %v444_v3 = vadd.f32 1.0, %v1456_v1 }
 0x5ba   :  { %v1458_v4 = vpop.eup %1457  ;;  %1459 = vrcp.f32 %v444_v3  ;;  %v470_v34 = vand.u32 2147483648, %v444_v3  ;;  %v468_v40 = vand.u32 2147483647, %v444_v3  ;;  %vm464_vm12 = vweird.f32 %v444_v3 }
 0x5bb   :  { %v446_v5 = vmul.f32 %v1458_v4, %v443_v0  ;;  %1461 = vtanh.f32 %v413_v48  ;;  %vm451_vm7 = vweird.f32 %v1458_v4 }
 0x5bc   :  { %vm452_vm9 = vmor %vm450_vm8, %vm451_vm7  ;;  %1463 = vtanh.f32 %v433_v53  ;;  %v471_v51 = vor.u32 1.1754944e-38, %v470_v34  ;;  %vm469_vm15 = vcmp.eq.f32.partialorder %v468_v40, 8.507059e+37 }
 0x5bd   :  { %v447_v20 = vsub.f32 1.0, %v446_v5 }
 0x5bf   :  { %v448_v19 = vmul.f32 %v1458_v4, %v447_v20 }
 0x5c0   :  { %v1460_v25 = vpop.eup %1459 }
 0x5c1   :  { %v449_v26 = vadd.f32 %v1458_v4, %v448_v19  ;;  %v460_v27 = vmul.f32 %v1460_v25, %v444_v3  ;;  %v1462_v31 = vpop.eup %1461  ;;  %vm465_vm11 = vweird.f32 %v1460_v25 }
 0x5c2   :  { %vm466_vm14 = vmor %vm464_vm12, %vm465_vm11  ;;  %v1464_v44 = vpop.eup %1463 }
 0x5c3   :  { %v453_v29 = vsel %vm452_vm9, %v1458_v4, %v449_v26  ;;  %v461_v30 = vsub.f32 1.0, %v460_v27 }
 0x5c4   :  { %v458_v32 = vsel %vm455_vm10, %v457_v28, %v453_v29 }
 0x5c5   :  { %v473_v37 = vsel %vm1740_vm5, %v1462_v31, %v458_v32  ;;  %v462_v38 = vmul.f32 %v1460_v25, %v461_v30 }
 0x5c6   :  { %477 = vrot.lane.b32.xlu0 %v473_v37, %s1560_s5  ;;  %v475_v52 = vmul.f32 %v473_v37, %v1906_v35 }
 0x5c7   :  { %v463_v41 = vadd.f32 %v1460_v25, %v462_v38 }
 0x5c9   :  { %v467_v43 = vsel %vm466_vm14, %v1460_v25, %v463_v41 }
 0x5ca   :  { %v472_v45 = vsel %vm469_vm15, %v471_v51, %v467_v43 }
 0x5cb   :  { %v474_v46 = vsel %vm1893_vm13, %v1464_v44, %v472_v45 }
 0x5cc   :  { %494 = vrot.lane.b32.xlu1 %v474_v46, %s1560_s5  ;;  %v492_v63 = vmul.f32 %v474_v46, %v1908_v36 }
 0x638   :  { %v478_v47 = vpop.permute.xlu0 %477 }
 0x639   :  { %v480_v48 = vmul.f32 %v478_v47, %v473_v37 }
 0x63b   :  { %482 = vrot.lane.b32.xlu2 %v480_v48, %s1559_s21 }
 0x63e   :  { %v495_v49 = vpop.permute.xlu1 %494 }
 0x63f   :  { %v497_v50 = vmul.f32 %v495_v49, %v474_v46 }
 0x641   :  { %499 = vrot.lane.b32.xlu0 %v497_v50, %s1559_s21 }
 0x695   :  { %v483_v53 = vpop.permute.xlu2 %482 }
 0x696   :  { %v1950_v57 = vadd.f32 %v483_v53, %v475_v52 }
 0x698   :  { %1465 = vtanh.f32 %v1950_v57 }
 0x69e   :  { %v1466_v59 = vpop.eup %1465 }
 0x69f   :  { %488 = vrot.lane.b32.xlu1 %v1466_v59, %s1560_s5 }
 0x6b3   :  { %v500_v0 = vpop.permute.xlu0 %499 }
 0x6b4   :  { %v1955_v1 = vadd.f32 %v500_v0, %v492_v63 }
 0x6b6   :  { %1467 = vtanh.f32 %v1955_v1 }
 0x6bc   :  { %v1468_v3 = vpop.eup %1467 }
 0x6bd   :  { %505 = vrot.lane.b32.xlu2 %v1468_v3, %s1560_s5 }
 0x711   :  { %v489_v4 = vpop.permute.xlu1 %488 }
 0x712   :  { %v491_v35 = vmul.f32 %v489_v4, %v473_v37 }
 0x714   :  { %516 = vrot.lane.b32.xlu0 %v491_v35, %s1559_s21 }
 0x717   :  { %v506_v5 = vpop.permute.xlu2 %505 }
 0x718   :  { %v1960_v20 = vmul.f32 %v506_v5, %v474_v46 }
 0x71a   :  { %519 = vrot.lane.b32.xlu1 %v1960_v20, %s1560_s5 }
 0x786   :  { %v517_v10 = vpop.permute.xlu0 %516 }
 0x78c   :  { %v520_v36 = vpop.permute.xlu1 %519 }
 0x78d   :  { %v522_v19 = vsel %vm51_vm0, %v517_v10, %v520_v36 }
 0x78e   :  { %1390 = vmatmul.msk.f32.vlgmr.msra.gmra.mxu3 %vm182_vm1, %v522_v19  ;;  %1391 = vmatmul.msk.f32.vlgmr.msrb.gmra.mxu1 %vm182_vm1, %v522_v19 }
 0x78f   :  { %939 = vmatpush.msra.mxu3 %v1644_v6  ;;  %1073 = vmatpush.msrb.mxu1 %v1644_v6 }
 0x791   :  { %940 = vmatpush.msra.mxu3 %v1650_v7  ;;  %1074 = vmatpush.msrb.mxu1 %v1650_v7 }
 0x793   :  { %941 = vmatpush.msra.mxu3 %v1656_v8  ;;  %1075 = vmatpush.msrb.mxu1 %v1656_v8 }
 0x795   :  { %942 = vmatpush.msra.mxu3 %v1663_v9  ;;  %1076 = vmatpush.msrb.mxu1 %v1663_v9  ;;  %v103_v9 = vadd.f32 %v1733_v23, %v1728_v21 }
 0x797   :  { %943 = vmatpush.msra.mxu3 %v1673_v11  ;;  %1077 = vmatpush.msrb.mxu1 %v1673_v11 }
 0x799   :  { %944 = vmatpush.msra.mxu3 %v1681_v12  ;;  %1078 = vmatpush.msrb.mxu1 %v1681_v12 }
 0x79b   :  { %945 = vmatpush.msra.mxu3 %v1688_v13  ;;  %1079 = vmatpush.msrb.mxu1 %v1688_v13 }
 0x79d   :  { %946 = vmatpush.msra.mxu3 %v1702_v15  ;;  %1080 = vmatpush.msrb.mxu1 %v1702_v15 }
 0x80b   :  { %v566_v6 = vpop.f32.mrf.mxu1 }
 0x80c   :  { %v567_v7 = vadd.f32 %v1889_v24, %v566_v6 }
 0x80e   :  { %v572_v8 = vsub.f32 0.0, %v567_v7 }
 0x810   :  { %v575_v11 = vmul.f32 1.442695, %v572_v8 }
 0x811   :  { %v546_v22 = vpop.f32.mrf.mxu3 }
 0x812   :  { %1469 = vpow2.f32 %v575_v11  ;;  %v547_v25 = vadd.f32 %v546_v22, %v103_v9 }
 0x814   :  { %v571_v12 = vsub.f32 0.0, %v547_v25 }
 0x816   :  { %v573_v26 = vmul.f32 1.442695, %v571_v12 }
 0x818   :  { %v1470_v27 = vpop.eup %1469  ;;  %1471 = vpow2.f32 %v573_v26 }
 0x819   :  { %v578_v13 = vadd.f32 1.0, %v1470_v27 }
 0x81b   :  { %1473 = vrcp.f32 %v578_v13  ;;  %v604_v32 = vand.u32 2147483648, %v578_v13  ;;  %v602_v21 = vand.u32 2147483647, %v578_v13  ;;  %vm598_vm3 = vweird.f32 %v578_v13 }
 0x81d   :  { %v605_v41 = vor.u32 1.1754944e-38, %v604_v32  ;;  %vm603_vm6 = vcmp.eq.f32.partialorder %v602_v21, 8.507059e+37 }
 0x81e   :  { %v1472_v28 = vpop.eup %1471 }
 0x81f   :  { %v577_v29 = vadd.f32 1.0, %v1472_v28 }
 0x821   :  { %v1474_v15 = vpop.eup %1473  ;;  %1475 = vrcp.f32 %v577_v29  ;;  %v590_v46 = vand.u32 2147483648, %v577_v29  ;;  %v588_v49 = vand.u32 2147483647, %v577_v29  ;;  %vm584_vm8 = vweird.f32 %v577_v29 }
 0x822   :  { %v594_v30 = vmul.f32 %v1474_v15, %v578_v13  ;;  %1477 = vtanh.f32 %v567_v7  ;;  %vm599_vm2 = vweird.f32 %v1474_v15 }
 0x823   :  { %vm600_vm4 = vmor %vm598_vm3, %vm599_vm2  ;;  %1479 = vtanh.f32 %v547_v25  ;;  %v591_v52 = vor.u32 1.1754944e-38, %v590_v46  ;;  %vm589_vm10 = vcmp.eq.f32.partialorder %v588_v49, 8.507059e+37 }
 0x824   :  { %v595_v31 = vsub.f32 1.0, %v594_v30 }
 0x826   :  { %v596_v34 = vmul.f32 %v1474_v15, %v595_v31 }
 0x827   :  { %v1476_v37 = vpop.eup %1475 }
 0x828   :  { %v597_v38 = vadd.f32 %v1474_v15, %v596_v34  ;;  %v580_v40 = vmul.f32 %v1476_v37, %v577_v29  ;;  %v1478_v44 = vpop.eup %1477  ;;  %vm585_vm7 = vweird.f32 %v1476_v37 }
 0x829   :  { %vm586_vm9 = vmor %vm584_vm8, %vm585_vm7  ;;  %v1480_v59 = vpop.eup %1479 }
 0x82a   :  { %v601_v51 = vsel %vm600_vm4, %v1474_v15, %v597_v38  ;;  %v581_v43 = vsub.f32 1.0, %v580_v40 }
 0x82b   :  { %v606_v45 = vsel %vm603_vm6, %v605_v41, %v601_v51 }
 0x82c   :  { %v608_v47 = vsel %vm1893_vm13, %v1478_v44, %v606_v45  ;;  %v582_v48 = vmul.f32 %v1476_v37, %v581_v43 }
 0x82d   :  { %628 = vrot.lane.b32.xlu0 %v608_v47, %s1560_s5  ;;  %v626_v10 = vmul.f32 %v608_v47, %v1955_v1 }
 0x82e   :  { %v583_v50 = vadd.f32 %v1476_v37, %v582_v48 }
 0x830   :  { %v587_v53 = vsel %vm586_vm9, %v1476_v37, %v583_v50 }
 0x831   :  { %v592_v63 = vsel %vm589_vm10, %v591_v52, %v587_v53 }
 0x832   :  { %v607_v0 = vsel %vm1740_vm5, %v1480_v59, %v592_v63 }
 0x833   :  { %611 = vrot.lane.b32.xlu2 %v607_v0, %s1560_s5  ;;  %v609_v6 = vmul.f32 %v607_v0, %v1950_v57 }
 0x88d   :  { %v612_v3 = vpop.permute.xlu2 %611 }
 0x88e   :  { %v614_v4 = vmul.f32 %v612_v3, %v607_v0 }
 0x890   :  { %616 = vrot.lane.b32.xlu1 %v614_v4, %s1559_s21 }
 0x89f   :  { %v629_v35 = vpop.permute.xlu0 %628 }
 0x8a0   :  { %v631_v5 = vmul.f32 %v629_v35, %v608_v47 }
 0x8a2   :  { %633 = vrot.lane.b32.xlu2 %v631_v5, %s1559_s21 }
 0x8fc   :  { %v634_v36 = vpop.permute.xlu2 %633 }
 0x8fd   :  { %v1995_v19 = vadd.f32 %v634_v36, %v626_v10 }
 0x8ff   :  { %1481 = vtanh.f32 %v1995_v19 }
 0x902   :  { %v617_v7 = vpop.permute.xlu1 %616 }
 0x903   :  { %v1999_v8 = vadd.f32 %v617_v7, %v609_v6 }
 0x905   :  { %v1482_v9 = vpop.eup %1481  ;;  %1483 = vtanh.f32 %v1999_v8 }
 0x906   :  { %639 = vrot.lane.b32.xlu1 %v1482_v9, %s1560_s5 }
 0x90b   :  { %v1484_v11 = vpop.eup %1483 }
 0x90c   :  { %622 = vrot.lane.b32.xlu0 %v1484_v11, %s1560_s5 }
 0x978   :  { %v640_v22 = vpop.permute.xlu1 %639 }
 0x979   :  { %v2004_v1 = vmul.f32 %v640_v22, %v608_v47 }
 0x97b   :  { %653 = vrot.lane.b32.xlu0 %v2004_v1, %s1560_s5 }
 0x97e   :  { %v623_v25 = vpop.permute.xlu0 %622 }
 0x97f   :  { %v625_v12 = vmul.f32 %v623_v25, %v607_v0 }
 0x981   :  { %650 = vrot.lane.b32.xlu2 %v625_v12, %s1559_s21 }
 0x9db   :  { %v651_v57 = vpop.permute.xlu2 %650 }
 0x9ed   :  { %v654_v26 = vpop.permute.xlu0 %653 }
 0x9ee   :  { %v656_v27 = vsel %vm51_vm0, %v651_v57, %v654_v26 }
 0x9ef   :  { %1392 = vmatmul.msk.f32.vlgmr.msrb.gmra.mxu2 %vm182_vm1, %v656_v27  ;;  %1393 = vmatmul.msk.f32.vlgmr.msrb.gmra.mxu3 %vm182_vm1, %v656_v27 }
 0x9f0   :  { %1093 = vmatpush.msrb.mxu2 %v1758_v54  ;;  %1205 = vmatpush.msrb.mxu3 %v1758_v54  ;;  %v106_v54 = vadd.f32 %v1733_v23, %v1877_v14 }
 0x9f2   :  { %1094 = vmatpush.msrb.mxu2 %v1765_v55  ;;  %1206 = vmatpush.msrb.mxu3 %v1765_v55 }
 0x9f4   :  { %1095 = vmatpush.msrb.mxu2 %v1770_v56  ;;  %1207 = vmatpush.msrb.mxu3 %v1770_v56 }
 0x9f6   :  { %1096 = vmatpush.msrb.mxu2 %v1782_v58  ;;  %1208 = vmatpush.msrb.mxu3 %v1782_v58 }
 0x9f8   :  { %1097 = vmatpush.msrb.mxu2 %v1794_v60  ;;  %1209 = vmatpush.msrb.mxu3 %v1794_v60 }
 0x9fa   :  { %1098 = vmatpush.msrb.mxu2 %v1803_v61  ;;  %1210 = vmatpush.msrb.mxu3 %v1803_v61 }
 0x9fc   :  { %1099 = vmatpush.msrb.mxu2 %v1812_v62  ;;  %1211 = vmatpush.msrb.mxu3 %v1812_v62 }
 0x9fe   :  { %1100 = vmatpush.msrb.mxu2 %v1835_v2  ;;  %1212 = vmatpush.msrb.mxu3 %v1835_v2 }
 0xa72   :  { %v680_v55 = vpop.f32.mrf.mxu2  ;;  %v700_v56 = vpop.f32.mrf.mxu3 }
 0xa73   :  { %v681_v58 = vadd.f32 %v680_v55, %v106_v54  ;;  %v701_v60 = vadd.f32 %v1889_v24, %v700_v56  ;;  %v2060_v55 = vld [vmem:[%s2259_s2] ss:$0 sm:$0xff] }
 0xa74   :  { %v109_v56 = vadd.f32 %v2060_v55, %v1879_v16 }
 0xa75   :  { %v705_v13 = vsub.f32 0.0, %v681_v58  ;;  %v706_v28 = vsub.f32 0.0, %v701_v60 }
 0xa77   :  { %v707_v29 = vmul.f32 1.442695, %v705_v13  ;;  %v709_v61 = vmul.f32 1.442695, %v706_v28 }
 0xa79   :  { %1485 = vpow2.f32 %v707_v29 }
 0xa7a   :  { %1487 = vpow2.f32 %v709_v61 }
 0xa7f   :  { %v1486_v15 = vpop.eup %1485 }
 0xa80   :  { %v1488_v62 = vpop.eup %1487  ;;  %v711_v30 = vadd.f32 1.0, %v1486_v15 }
 0xa81   :  { %v712_v31 = vadd.f32 1.0, %v1488_v62 }
 0xa82   :  { %1489 = vrcp.f32 %v711_v30  ;;  %v724_v37 = vand.u32 2147483648, %v711_v30  ;;  %v722_v41 = vand.u32 2147483647, %v711_v30  ;;  %vm718_vm14 = vweird.f32 %v711_v30 }
 0xa83   :  { %1491 = vrcp.f32 %v712_v31  ;;  %v738_v38 = vand.u32 2147483648, %v712_v31  ;;  %v736_v43 = vand.u32 2147483647, %v712_v31  ;;  %vm732_vm15 = vweird.f32 %v712_v31 }
 0xa84   :  { %1493 = vtanh.f32 %v681_v58  ;;  %v725_v46 = vor.u32 1.1754944e-38, %v724_v37  ;;  %vm723_vm4 = vcmp.eq.f32.partialorder %v722_v41, 8.507059e+37 }
 0xa85   :  { %1495 = vtanh.f32 %v701_v60  ;;  %v739_v48 = vor.u32 1.1754944e-38, %v738_v38  ;;  %vm737_vm6 = vcmp.eq.f32.partialorder %v736_v43, 8.507059e+37 }
 0xa88   :  { %v1490_v2 = vpop.eup %1489 }
 0xa89   :  { %v1492_v32 = vpop.eup %1491  ;;  %v714_v23 = vmul.f32 %v1490_v2, %v711_v30  ;;  %vm719_vm11 = vweird.f32 %v1490_v2 }
 0xa8a   :  { %v728_v14 = vmul.f32 %v1492_v32, %v712_v31  ;;  %vm733_vm12 = vweird.f32 %v1492_v32  ;;  %vm720_vm2 = vmor %vm718_vm14, %vm719_vm11  ;;  %v1494_v47 = vpop.eup %1493 }
 0xa8b   :  { %v715_v34 = vsub.f32 1.0, %v714_v23  ;;  %vm734_vm3 = vmor %vm732_vm15, %vm733_vm12  ;;  %v1496_v50 = vpop.eup %1495 }
 0xa8c   :  { %v729_v21 = vsub.f32 1.0, %v728_v14 }
 0xa8d   :  { %v716_v40 = vmul.f32 %v1490_v2, %v715_v34 }
 0xa8e   :  { %v730_v51 = vmul.f32 %v1492_v32, %v729_v21 }
 0xa8f   :  { %v717_v44 = vadd.f32 %v1490_v2, %v716_v40 }
 0xa90   :  { %v731_v45 = vadd.f32 %v1492_v32, %v730_v51 }
 0xa91   :  { %v721_v49 = vsel %vm720_vm2, %v1490_v2, %v717_v44 }
 0xa92   :  { %v735_v52 = vsel %vm734_vm3, %v1492_v32, %v731_v45  ;;  %v726_v53 = vsel %vm723_vm4, %v725_v46, %v721_v49 }
 0xa93   :  { %v740_v59 = vsel %vm737_vm6, %v739_v48, %v735_v52  ;;  %v741_v63 = vsel %vm1740_vm5, %v1494_v47, %v726_v53 }
 0xa94   :  { %v742_v0 = vsel %vm1893_vm13, %v1496_v50, %v740_v59  ;;  %745 = vrot.lane.b32.xlu1 %v741_v63, %s1560_s5  ;;  %v743_v9 = vmul.f32 %v741_v63, %v1999_v8 }
 0xa95   :  { %762 = vrot.lane.b32.xlu2 %v742_v0, %s1560_s5  ;;  %v760_v10 = vmul.f32 %v742_v0, %v1995_v19 }
 0xaef   :  { %v763_v3 = vpop.permute.xlu2 %762 }
 0xaf0   :  { %v765_v4 = vmul.f32 %v763_v3, %v742_v0 }
 0xaf2   :  { %767 = vrot.lane.b32.xlu1 %v765_v4, %s1559_s21 }
 0xb06   :  { %v746_v35 = vpop.permute.xlu1 %745 }
 0xb07   :  { %v748_v5 = vmul.f32 %v746_v35, %v741_v63 }
 0xb09   :  { %750 = vrot.lane.b32.xlu0 %v748_v5, %s1559_s21 }
 0xb64   :  { %v768_v36 = vpop.permute.xlu1 %767 }
 0xb65   :  { %v2040_v6 = vadd.f32 %v768_v36, %v760_v10 }
 0xb67   :  { %1497 = vtanh.f32 %v2040_v6 }
 0xb6d   :  { %v1498_v7 = vpop.eup %1497 }
 0xb6e   :  { %773 = vrot.lane.b32.xlu0 %v1498_v7, %s1560_s5 }
 0xb7b   :  { %v751_v11 = vpop.permute.xlu0 %750 }
 0xb7c   :  { %v2045_v22 = vadd.f32 %v751_v11, %v743_v9 }
 0xb7e   :  { %1499 = vtanh.f32 %v2045_v22 }
 0xb84   :  { %v1500_v25 = vpop.eup %1499 }
 0xb85   :  { %756 = vrot.lane.b32.xlu2 %v1500_v25, %s1560_s5 }
 0xbdf   :  { %v757_v12 = vpop.permute.xlu2 %756 }
 0xbe0   :  { %v774_v19 = vpop.permute.xlu0 %773  ;;  %v759_v57 = vmul.f32 %v757_v12, %v741_v63 }
 0xbe1   :  { %v2049_v26 = vmul.f32 %v774_v19, %v742_v0 }
 0xbe2   :  { %784 = vrot.lane.b32.xlu1 %v759_v57, %s1559_s21 }
 0xbe3   :  { %787 = vrot.lane.b32.xlu2 %v2049_v26, %s1560_s5 }
 0xc3d   :  { %v788_v27 = vpop.permute.xlu2 %787 }
 0xc54   :  { %v785_v8 = vpop.permute.xlu1 %784 }
 0xc55   :  { %v790_v54 = vsel %vm51_vm0, %v785_v8, %v788_v27 }
 0xc56   :  { %1394 = vmatmul.msk.f32.vlgmr.msra.gmra.mxu1 %vm182_vm1, %v790_v54  ;;  %1395 = vmatmul.msk.f32.vlgmr.msra.gmra.mxu2 %vm182_vm1, %v790_v54 }
 0xcd3   :  { %v814_v58 = vpop.f32.mrf.mxu1 }
 0xcd4   :  { %v815_v60 = vadd.f32 %v814_v58, %v109_v56 }
 0xcd6   :  { %v839_v13 = vsub.f32 0.0, %v815_v60 }
 0xcd8   :  { %v841_v28 = vmul.f32 1.442695, %v839_v13 }
 0xcd9   :  { %v834_v29 = vpop.f32.mrf.mxu2 }
 0xcda   :  { %1501 = vpow2.f32 %v841_v28  ;;  %v835_v61 = vadd.f32 %v1889_v24, %v834_v29  ;;  %v112_v29 = vadd.f32 %v2060_v55, %v1881_v17 }
 0xcdc   :  { %v840_v15 = vsub.f32 0.0, %v835_v61 }
 0xcde   :  { %v843_v62 = vmul.f32 1.442695, %v840_v15 }
 0xce0   :  { %v1502_v30 = vpop.eup %1501  ;;  %1503 = vpow2.f32 %v843_v62 }
 0xce1   :  { %v845_v31 = vadd.f32 1.0, %v1502_v30 }
 0xce3   :  { %1505 = vrcp.f32 %v845_v31  ;;  %v858_v34 = vand.u32 2147483648, %v845_v31  ;;  %v856_v37 = vand.u32 2147483647, %v845_v31  ;;  %vm852_vm8 = vweird.f32 %v845_v31 }
 0xce5   :  { %v859_v51 = vor.u32 1.1754944e-38, %v858_v34  ;;  %vm857_vm10 = vcmp.eq.f32.partialorder %v856_v37, 8.507059e+37 }
 0xce6   :  { %v1504_v2 = vpop.eup %1503 }
 0xce7   :  { %v846_v32 = vadd.f32 1.0, %v1504_v2 }
 0xce9   :  { %v1506_v23 = vpop.eup %1505  ;;  %1507 = vrcp.f32 %v846_v32  ;;  %v872_v47 = vand.u32 2147483648, %v846_v32  ;;  %v870_v50 = vand.u32 2147483647, %v846_v32  ;;  %vm866_vm12 = vweird.f32 %v846_v32 }
 0xcea   :  { %v848_v14 = vmul.f32 %v1506_v23, %v845_v31  ;;  %1509 = vtanh.f32 %v815_v60  ;;  %vm853_vm7 = vweird.f32 %v1506_v23 }
 0xceb   :  { %vm854_vm9 = vmor %vm852_vm8, %vm853_vm7  ;;  %1511 = vtanh.f32 %v835_v61  ;;  %v873_v53 = vor.u32 1.1754944e-38, %v872_v47  ;;  %vm871_vm15 = vcmp.eq.f32.partialorder %v870_v50, 8.507059e+37 }
 0xcec   :  { %v849_v16 = vsub.f32 1.0, %v848_v14 }
 0xcee   :  { %v850_v21 = vmul.f32 %v1506_v23, %v849_v16 }
 0xcef   :  { %v1508_v38 = vpop.eup %1507 }
 0xcf0   :  { %v851_v40 = vadd.f32 %v1506_v23, %v850_v21  ;;  %v862_v41 = vmul.f32 %v1508_v38, %v846_v32  ;;  %v1510_v45 = vpop.eup %1509  ;;  %vm867_vm11 = vweird.f32 %v1508_v38 }
 0xcf1   :  { %vm868_vm14 = vmor %vm866_vm12, %vm867_vm11  ;;  %v1512_v63 = vpop.eup %1511 }
 0xcf2   :  { %v855_v43 = vsel %vm854_vm9, %v1506_v23, %v851_v40  ;;  %v863_v44 = vsub.f32 1.0, %v862_v41 }
 0xcf3   :  { %v860_v46 = vsel %vm857_vm10, %v859_v51, %v855_v43 }
 0xcf4   :  { %v875_v48 = vsel %vm1740_vm5, %v1510_v45, %v860_v46  ;;  %v864_v49 = vmul.f32 %v1508_v38, %v863_v44 }
 0xcf5   :  { %879 = vrot.lane.b32.xlu0 %v875_v48, %s1560_s5  ;;  %v877_v36 = vmul.f32 %v875_v48, %v2045_v22 }
 0xcf6   :  { %v865_v52 = vadd.f32 %v1508_v38, %v864_v49 }
 0xcf8   :  { %v869_v59 = vsel %vm868_vm14, %v1508_v38, %v865_v52 }
 0xcf9   :  { %v874_v0 = vsel %vm871_vm15, %v873_v53, %v869_v59 }
 0xcfa   :  { %v876_v3 = vsel %vm1893_vm13, %v1512_v63, %v874_v0 }
 0xcfb   :  { %896 = vrot.lane.b32.xlu1 %v876_v3, %s1560_s5  ;;  %v894_v25 = vmul.f32 %v876_v3, %v2040_v6 }
 0xd67   :  { %v880_v4 = vpop.permute.xlu0 %879 }
 0xd68   :  { %v882_v35 = vmul.f32 %v880_v4, %v875_v48 }
 0xd6a   :  { %884 = vrot.lane.b32.xlu2 %v882_v35, %s1559_s21 }
 0xd6d   :  { %v897_v5 = vpop.permute.xlu1 %896 }
 0xd6e   :  { %v899_v10 = vmul.f32 %v897_v5, %v876_v3 }
 0xd70   :  { %901 = vrot.lane.b32.xlu0 %v899_v10, %s1559_s21 }
 0xdc4   :  { %v885_v7 = vpop.permute.xlu2 %884 }
 0xdc5   :  { %v2074_v9 = vadd.f32 %v885_v7, %v877_v36 }
 0xdc7   :  { %1513 = vtanh.f32 %v2074_v9 }
 0xdcd   :  { %v1514_v11 = vpop.eup %1513 }
 0xdce   :  { %890 = vrot.lane.b32.xlu1 %v1514_v11, %s1560_s5 }
 0xde2   :  { %v902_v12 = vpop.permute.xlu0 %901 }
 0xde3   :  { %v2079_v19 = vadd.f32 %v902_v12, %v894_v25 }
 0xde5   :  { %1515 = vtanh.f32 %v2079_v19 }
 0xdeb   :  { %v1516_v57 = vpop.eup %1515 }
 0xdec   :  { %907 = vrot.lane.b32.xlu2 %v1516_v57, %s1560_s5 }
 0xe40   :  { %v891_v27 = vpop.permute.xlu1 %890 }
 0xe41   :  { %v893_v22 = vmul.f32 %v891_v27, %v875_v48 }
 0xe43   :  { %918 = vrot.lane.b32.xlu0 %v893_v22, %s1559_s21 }
 0xe46   :  { %v908_v8 = vpop.permute.xlu2 %907 }
 0xe47   :  { %v2084_v54 = vmul.f32 %v908_v8, %v876_v3 }
 0xe49   :  { %921 = vrot.lane.b32.xlu1 %v2084_v54, %s1560_s5 }
 0xeb5   :  { %v919_v56 = vpop.permute.xlu0 %918 }
 0xebb   :  { %v922_v6 = vpop.permute.xlu1 %921 }
 0xebc   :  { %v924_v58 = vsel %vm51_vm0, %v919_v56, %v922_v6 }
 0xebd   :  { %1396 = vmatmul.msk.f32.vlgmr.msra.gmra.mxu3 %vm182_vm1, %v924_v58  ;;  %1397 = vmatmul.msk.f32.vlgmr.msrb.gmra.mxu0 %vm182_vm1, %v924_v58 }
 0xf3a   :  { %v968_v60 = vpop.f32.mrf.mxu0 }
 0xf3b   :  { %v969_v13 = vadd.f32 %v1889_v24, %v968_v60 }
 0xf3d   :  { %v974_v28 = vsub.f32 0.0, %v969_v13 }
 0xf3f   :  { %v977_v61 = vmul.f32 1.442695, %v974_v28 }
 0xf40   :  { %v948_v15 = vpop.f32.mrf.mxu3 }
 0xf41   :  { %1517 = vpow2.f32 %v977_v61  ;;  %v949_v62 = vadd.f32 %v948_v15, %v112_v29 }
 0xf43   :  { %v973_v30 = vsub.f32 0.0, %v949_v62 }
 0xf45   :  { %v975_v31 = vmul.f32 1.442695, %v973_v30  ;;  %v2125_v30 = vld [vmem:[%s2261_s4] ss:$0 sm:$0xff]  ;;  %s1561_s4 = smov 96  }
 0xf47   :  { %v1518_v2 = vpop.eup %1517  ;;  %1519 = vpow2.f32 %v975_v31 }
 0xf48   :  { %v980_v32 = vadd.f32 1.0, %v1518_v2 }
 0xf4a   :  { %1521 = vrcp.f32 %v980_v32  ;;  %v1006_v21 = vand.u32 2147483648, %v980_v32  ;;  %v1004_v17 = vand.u32 2147483647, %v980_v32  ;;  %vm1000_vm3 = vweird.f32 %v980_v32 }
 0xf4c   :  { %v1007_v51 = vor.u32 1.1754944e-38, %v1006_v21  ;;  %vm1005_vm6 = vcmp.eq.f32.partialorder %v1004_v17, 8.507059e+37 }
 0xf4d   :  { %v1520_v23 = vpop.eup %1519 }
 0xf4e   :  { %v979_v14 = vadd.f32 1.0, %v1520_v23 }
 0xf50   :  { %v1522_v16 = vpop.eup %1521  ;;  %1523 = vrcp.f32 %v979_v14  ;;  %v992_v47 = vand.u32 2147483648, %v979_v14  ;;  %v990_v50 = vand.u32 2147483647, %v979_v14  ;;  %vm986_vm8 = vweird.f32 %v979_v14 }
 0xf51   :  { %v996_v34 = vmul.f32 %v1522_v16, %v980_v32  ;;  %1525 = vtanh.f32 %v969_v13  ;;  %vm1001_vm2 = vweird.f32 %v1522_v16  ;;  %v115_v13 = vadd.f32 %v2060_v55, %v1883_v18 }
 0xf52   :  { %vm1002_vm4 = vmor %vm1000_vm3, %vm1001_vm2  ;;  %1527 = vtanh.f32 %v949_v62  ;;  %v993_v53 = vor.u32 1.1754944e-38, %v992_v47  ;;  %vm991_vm10 = vcmp.eq.f32.partialorder %v990_v50, 8.507059e+37 }
 0xf53   :  { %v997_v24 = vsub.f32 1.0, %v996_v34 }
 0xf55   :  { %v998_v37 = vmul.f32 %v1522_v16, %v997_v24 }
 0xf56   :  { %v1524_v38 = vpop.eup %1523 }
 0xf57   :  { %v999_v40 = vadd.f32 %v1522_v16, %v998_v37  ;;  %v982_v41 = vmul.f32 %v1524_v38, %v979_v14  ;;  %v1526_v45 = vpop.eup %1525  ;;  %vm987_vm7 = vweird.f32 %v1524_v38 }
 0xf58   :  { %vm988_vm9 = vmor %vm986_vm8, %vm987_vm7  ;;  %v1528_v63 = vpop.eup %1527 }
 0xf59   :  { %v1003_v43 = vsel %vm1002_vm4, %v1522_v16, %v999_v40  ;;  %v983_v44 = vsub.f32 1.0, %v982_v41 }
 0xf5a   :  { %v1008_v46 = vsel %vm1005_vm6, %v1007_v51, %v1003_v43 }
 0xf5b   :  { %v1010_v48 = vsel %vm1893_vm13, %v1526_v45, %v1008_v46  ;;  %v984_v49 = vmul.f32 %v1524_v38, %v983_v44 }
 0xf5c   :  { %1030 = vrot.lane.b32.xlu0 %v1010_v48, %s1560_s5  ;;  %v1028_v36 = vmul.f32 %v1010_v48, %v2079_v19 }
 0xf5d   :  { %v985_v52 = vadd.f32 %v1524_v38, %v984_v49 }
 0xf5f   :  { %v989_v59 = vsel %vm988_vm9, %v1524_v38, %v985_v52 }
 0xf60   :  { %v994_v0 = vsel %vm991_vm10, %v993_v53, %v989_v59 }
 0xf61   :  { %v1009_v3 = vsel %vm1740_vm5, %v1528_v63, %v994_v0 }
 0xf62   :  { %1013 = vrot.lane.b32.xlu2 %v1009_v3, %s1560_s5  ;;  %v1011_v25 = vmul.f32 %v1009_v3, %v2074_v9 }
 0xfbc   :  { %v1014_v4 = vpop.permute.xlu2 %1013 }
 0xfbd   :  { %v1016_v35 = vmul.f32 %v1014_v4, %v1009_v3 }
 0xfbf   :  { %1018 = vrot.lane.b32.xlu1 %v1016_v35, %s1559_s21 }
 0xfce   :  { %v1031_v5 = vpop.permute.xlu0 %1030 }
 0xfcf   :  { %v1033_v10 = vmul.f32 %v1031_v5, %v1010_v48 }
 0xfd1   :  { %1035 = vrot.lane.b32.xlu2 %v1033_v10, %s1559_s21 }
0x102b   :  { %v1036_v7 = vpop.permute.xlu2 %1035 }
0x102c   :  { %v2103_v11 = vadd.f32 %v1036_v7, %v1028_v36 }
0x102e   :  { %1529 = vtanh.f32 %v2103_v11 }
0x1031   :  { %v1019_v12 = vpop.permute.xlu1 %1018 }
0x1032   :  { %v2107_v57 = vadd.f32 %v1019_v12, %v1011_v25 }
0x1034   :  { %v1530_v27 = vpop.eup %1529  ;;  %1531 = vtanh.f32 %v2107_v57 }
0x1035   :  { %1041 = vrot.lane.b32.xlu1 %v1530_v27, %s1560_s5 }
0x103a   :  { %v1532_v22 = vpop.eup %1531 }
0x103b   :  { %1024 = vrot.lane.b32.xlu0 %v1532_v22, %s1560_s5 }
0x10a7   :  { %v1042_v8 = vpop.permute.xlu1 %1041 }
0x10a8   :  { %v2112_v19 = vmul.f32 %v1042_v8, %v1010_v48 }
0x10aa   :  { %1055 = vrot.lane.b32.xlu0 %v2112_v19, %s1560_s5 }
0x10ad   :  { %v1025_v56 = vpop.permute.xlu0 %1024 }
0x10ae   :  { %v1027_v6 = vmul.f32 %v1025_v56, %v1009_v3 }
0x10b0   :  { %1052 = vrot.lane.b32.xlu2 %v1027_v6, %s1559_s21 }
0x110a   :  { %v1053_v9 = vpop.permute.xlu2 %1052 }
0x111c   :  { %v1056_v58 = vpop.permute.xlu0 %1055 }
0x111d   :  { %v1058_v60 = vsel %vm51_vm0, %v1053_v9, %v1056_v58  ;;  %v1284_v58 = vld [vmem:[%s2263_s7 + $0x10] sm:$0xff] }
0x111e   :  { %1398 = vmatmul.msk.f32.vlgmr.msrb.gmra.mxu1 %vm182_vm1, %v1058_v60  ;;  %1399 = vmatmul.msk.f32.vlgmr.msrb.gmra.mxu2 %vm182_vm1, %v1058_v60 }
0x119b   :  { %v1082_v28 = vpop.f32.mrf.mxu1 }
0x119c   :  { %v1083_v29 = vadd.f32 %v1082_v28, %v115_v13 }
0x119e   :  { %v1107_v61 = vsub.f32 0.0, %v1083_v29 }
0x11a0   :  { %v1109_v15 = vmul.f32 1.442695, %v1107_v61 }
0x11a1   :  { %v1102_v62 = vpop.f32.mrf.mxu2 }
0x11a2   :  { %1533 = vpow2.f32 %v1109_v15  ;;  %v1103_v31 = vadd.f32 %v2125_v30, %v1102_v62 }
0x11a4   :  { %v1108_v2 = vsub.f32 0.0, %v1103_v31 }
0x11a6   :  { %v1111_v32 = vmul.f32 1.442695, %v1108_v2 }
0x11a8   :  { %v1534_v23 = vpop.eup %1533  ;;  %1535 = vpow2.f32 %v1111_v32 }
0x11a9   :  { %v1113_v14 = vadd.f32 1.0, %v1534_v23 }
0x11ab   :  { %1537 = vrcp.f32 %v1113_v14  ;;  %v1126_v21 = vand.u32 2147483648, %v1113_v14  ;;  %v1124_v17 = vand.u32 2147483647, %v1113_v14  ;;  %vm1120_vm12 = vweird.f32 %v1113_v14 }
0x11ad   :  { %v1127_v51 = vor.u32 1.1754944e-38, %v1126_v21  ;;  %vm1125_vm15 = vcmp.eq.f32.partialorder %v1124_v17, 8.507059e+37 }
0x11ae   :  { %v1536_v18 = vpop.eup %1535 }
0x11af   :  { %v1114_v55 = vadd.f32 1.0, %v1536_v18 }
0x11b1   :  { %v1538_v16 = vpop.eup %1537  ;;  %1539 = vrcp.f32 %v1114_v55  ;;  %v1140_v47 = vand.u32 2147483648, %v1114_v55  ;;  %v1138_v50 = vand.u32 2147483647, %v1114_v55  ;;  %vm1134_vm3 = vweird.f32 %v1114_v55 }
0x11b2   :  { %v1116_v34 = vmul.f32 %v1538_v16, %v1113_v14  ;;  %1541 = vtanh.f32 %v1083_v29  ;;  %vm1121_vm11 = vweird.f32 %v1538_v16 }
0x11b3   :  { %vm1122_vm14 = vmor %vm1120_vm12, %vm1121_vm11  ;;  %1543 = vtanh.f32 %v1103_v31  ;;  %v1141_v53 = vor.u32 1.1754944e-38, %v1140_v47  ;;  %vm1139_vm6 = vcmp.eq.f32.partialorder %v1138_v50, 8.507059e+37  ;;  %v2184_v31 = vld [vmem:[%s2262_s8] ss:$0 sm:$0xff] }
0x11b4   :  { %v1117_v24 = vsub.f32 1.0, %v1116_v34 }
0x11b6   :  { %v1118_v37 = vmul.f32 %v1538_v16, %v1117_v24 }
0x11b7   :  { %v1540_v38 = vpop.eup %1539 }
0x11b8   :  { %v1119_v40 = vadd.f32 %v1538_v16, %v1118_v37  ;;  %v1130_v41 = vmul.f32 %v1540_v38, %v1114_v55  ;;  %v1542_v45 = vpop.eup %1541  ;;  %vm1135_vm2 = vweird.f32 %v1540_v38 }
0x11b9   :  { %vm1136_vm4 = vmor %vm1134_vm3, %vm1135_vm2  ;;  %v1544_v63 = vpop.eup %1543 }
0x11ba   :  { %v1123_v43 = vsel %vm1122_vm14, %v1538_v16, %v1119_v40  ;;  %v1131_v44 = vsub.f32 1.0, %v1130_v41 }
0x11bb   :  { %v1128_v46 = vsel %vm1125_vm15, %v1127_v51, %v1123_v43 }
0x11bc   :  { %v1143_v48 = vsel %vm1740_vm5, %v1542_v45, %v1128_v46  ;;  %v1132_v49 = vmul.f32 %v1540_v38, %v1131_v44 }
0x11bd   :  { %1147 = vrot.lane.b32.xlu1 %v1143_v48, %s1560_s5  ;;  %v1145_v12 = vmul.f32 %v1143_v48, %v2107_v57  ;;  %v1285_v57 = vld [vmem:[%s2263_s7 + $0x18] sm:$0xff] }
0x11be   :  { %v1133_v52 = vadd.f32 %v1540_v38, %v1132_v49  ;;  %1326 = vmatpush.msra.mxu0 %v1285_v57 }
0x11c0   :  { %v1137_v59 = vsel %vm1136_vm4, %v1540_v38, %v1133_v52  ;;  %1327 = vmatpush.msra.mxu0 %v1284_v58 }
0x11c1   :  { %v1142_v0 = vsel %vm1139_vm6, %v1141_v53, %v1137_v59 }
0x11c2   :  { %v1144_v3 = vsel %vm1893_vm13, %v1544_v63, %v1142_v0 }
0x11c3   :  { %1164 = vrot.lane.b32.xlu2 %v1144_v3, %s1560_s5  ;;  %v1162_v10 = vmul.f32 %v1144_v3, %v2103_v11 }
0x121d   :  { %v1165_v39 = vpop.permute.xlu2 %1164 }
0x121e   :  { %v1167_v4 = vmul.f32 %v1165_v39, %v1144_v3 }
0x1220   :  { %1169 = vrot.lane.b32.xlu1 %v1167_v4, %s1559_s21 }
0x122f   :  { %v1148_v35 = vpop.permute.xlu1 %1147 }
0x1230   :  { %v1150_v5 = vmul.f32 %v1148_v35, %v1143_v48 }
0x1232   :  { %1152 = vrot.lane.b32.xlu0 %v1150_v5, %s1559_s21 }
0x1292   :  { %v1170_v36 = vpop.permute.xlu1 %1169 }
0x1293   :  { %v2137_v7 = vadd.f32 %v1170_v36, %v1162_v10 }
0x1295   :  { %1545 = vtanh.f32 %v2137_v7 }
0x129b   :  { %v1546_v25 = vpop.eup %1545 }
0x129c   :  { %1175 = vrot.lane.b32.xlu0 %v1546_v25, %s1560_s5 }
0x12a4   :  { %v1153_v27 = vpop.permute.xlu0 %1152 }
0x12a5   :  { %v1155_v22 = vadd.f32 %v1153_v27, %v1145_v12 }
0x12a7   :  { %1547 = vtanh.f32 %v1155_v22 }
0x12ad   :  { %v1548_v8 = vpop.eup %1547 }
0x12ae   :  { %1158 = vrot.lane.b32.xlu2 %v1548_v8, %s1560_s5 }
0x1308   :  { %v1159_v56 = vpop.permute.xlu2 %1158 }
0x1309   :  { %v1161_v6 = vmul.f32 %v1159_v56, %v1143_v48 }
0x130b   :  { %1186 = vrot.lane.b32.xlu1 %v1161_v6, %s1559_s21 }
0x130e   :  { %v1176_v11 = vpop.permute.xlu0 %1175 }
0x130f   :  { %v2144_v9 = vmul.f32 %v1176_v11, %v1144_v3 }
0x1311   :  { %1189 = vrot.lane.b32.xlu2 %v2144_v9, %s1560_s5 }
0x1319   :  { %377 = vrot.lane.b32.xlu2 %v1915_v42, %s1559_s21  ;;  %v1283_v42 = vld [vmem:[%s2263_s7 + $0x8] sm:$0xff] }
0x131a   :  { %1328 = vmatpush.msra.mxu0 %v1283_v42 }
0x1321   :  { %644 = vrot.lane.b32.xlu2 %v2004_v1, %s1559_s21  ;;  %v1282_v1 = vld [vmem:[%s2263_s7] sm:$0xff] }
0x1322   :  { %1329 = vmatpush.msra.mxu0 %v1282_v1 }
0x1329   :  { %1046 = vrot.lane.b32.xlu2 %v2112_v19, %s1559_s21 }
0x1331   :  { %1264 = vrot.lane.b32.xlu2 %v1155_v22, %s1561_s4 }
0x136b   :  { %v1190_v19 = vpop.permute.xlu2 %1189 }
0x1373   :  { %v378_v60 = vpop.permute.xlu2 %377 }
0x1374   :  { %380 = vst.msk [vmem:[#allocation3] sm:$0xff] %vm51_vm0, %v378_v60 }
0x137b   :  { %v645_v13 = vpop.permute.xlu2 %644  ;;  %v1274_v28 = vld [vmem:[#allocation3] sm:$0xff] }
0x137c   :  { %648 = vst.msk [vmem:[#allocation3 + $0x10] sm:$0xff] %vm51_vm0, %v645_v13  ;;  %1403 = vmatmul.msk.f32.vlgmr.msra.gmra.mxu0 %vm51_vm0, %v1274_v28 }
0x137d   :  { %v1187_v29 = vpop.permute.xlu1 %1186 }
0x137e   :  { %v1192_v61 = vsel %vm51_vm0, %v1187_v29, %v1190_v19  ;;  %1260 = vst.msk [vmem:[%s2264_s10] sm:$0xff] %vm51_vm0, %v1187_v29 }
0x137f   :  { %1400 = vmatmul.msk.f32.vlgmr.msrb.gmra.mxu3 %vm182_vm1, %v1192_v61 }
0x1383   :  { %v1047_v15 = vpop.permute.xlu2 %1046  ;;  %v1276_v50 = vld [vmem:[#allocation3 + $0x10] sm:$0xff] }
0x1384   :  { %1050 = vst.msk [vmem:[#allocation3 + $0x28] sm:$0xff] %vm51_vm0, %v1047_v15 }
0x138b   :  { %v1265_v62 = vpop.permute.xlu2 %1264  ;;  %v1279_v12 = vld [vmem:[#allocation3 + $0x28] sm:$0xff] }
0x138c   :  { %1267 = vst.msk [vmem:[%s2265_s11] sm:$0xff] %vm51_vm0, %v1265_v62 }
0x13f9   :  { %v1331_v2 = vpop.f32.mrf.mxu0 }
0x13fa   :  { %v1332_v32 = vadd.f32 %v2184_v31, %v1331_v2 }
0x13fc   :  { %1355 = vst [vmem:[%s2266_s9] sm:$0xff] %v1332_v32 }
0x1402   :  { %v1214_v23 = vpop.f32.mrf.mxu3 }
0x1403   :  { %v1215_v14 = vadd.f32 %v2125_v30, %v1214_v23 }
0x1405   :  { %v1218_v18 = vsub.f32 0.0, %v1215_v14 }
0x1407   :  { %v1219_v55 = vmul.f32 1.442695, %v1218_v18 }
0x1409   :  { %1549 = vpow2.f32 %v1219_v55 }
0x140f   :  { %v1550_v16 = vpop.eup %1549 }
0x1410   :  { %v1221_v34 = vadd.f32 1.0, %v1550_v16 }
0x1412   :  { %1551 = vrcp.f32 %v1221_v34  ;;  %v1233_v17 = vand.u32 2147483648, %v1221_v34  ;;  %v1231_v40 = vand.u32 2147483647, %v1221_v34  ;;  %vm1227_vm5 = vweird.f32 %v1221_v34 }
0x1413   :  { %1553 = vtanh.f32 %v1215_v14 }
0x1414   :  { %v1234_v51 = vor.u32 1.1754944e-38, %v1233_v17  ;;  %vm1232_vm8 = vcmp.eq.f32.partialorder %v1231_v40, 8.507059e+37 }
0x1418   :  { %v1552_v24 = vpop.eup %1551 }
0x1419   :  { %v1223_v21 = vmul.f32 %v1552_v24, %v1221_v34  ;;  %vm1228_vm1 = vweird.f32 %v1552_v24  ;;  %v1554_v30 = vpop.eup %1553 }
0x141a   :  { %vm1229_vm7 = vmor %vm1227_vm5, %vm1228_vm1 }
0x141b   :  { %v1224_v37 = vsub.f32 1.0, %v1223_v21 }
0x141d   :  { %v1225_v38 = vmul.f32 %v1552_v24, %v1224_v37 }
0x141f   :  { %v1226_v41 = vadd.f32 %v1552_v24, %v1225_v38 }
0x1421   :  { %v1230_v43 = vsel %vm1229_vm7, %v1552_v24, %v1226_v41 }
0x1422   :  { %v1235_v44 = vsel %vm1232_vm8, %v1234_v51, %v1230_v43 }
0x1423   :  { %v1236_v45 = vsel %vm1893_vm13, %v1554_v30, %v1235_v44 }
0x1424   :  { %1239 = vrot.lane.b32.xlu0 %v1236_v45, %s1560_s5  ;;  %v1237_v52 = vmul.f32 %v1236_v45, %v2137_v7 }
0x142c   :  { %510 = vrot.lane.b32.xlu0 %v1960_v20, %s1559_s21 }
0x1434   :  { %778 = vrot.lane.b32.xlu0 %v2049_v26, %s1559_s21 }
0x143c   :  { %1180 = vrot.lane.b32.xlu0 %v2144_v9, %s1559_s21 }
0x1496   :  { %v1240_v46 = vpop.permute.xlu0 %1239 }
0x1497   :  { %v1242_v47 = vmul.f32 %v1240_v46, %v1236_v45 }
0x1499   :  { %1244 = vrot.lane.b32.xlu1 %v1242_v47, %s1559_s21 }
0x149e   :  { %v511_v48 = vpop.permute.xlu0 %510 }
0x149f   :  { %514 = vst.msk [vmem:[#allocation3 + $0x8] sm:$0xff] %vm51_vm0, %v511_v48 }
0x14a6   :  { %v779_v33 = vpop.permute.xlu0 %778  ;;  %v1275_v49 = vld [vmem:[#allocation3 + $0x8] sm:$0xff] }
0x14a7   :  { %782 = vst.msk [vmem:[#allocation3 + $0x18] sm:$0xff] %vm51_vm0, %v779_v33  ;;  %1404 = vmatmul.msk.f32.gmra.mxu0 %vm51_vm0, %v1275_v49 }
0x14ae   :  { %v1181_v20 = vpop.permute.xlu0 %1180  ;;  %v1277_v26 = vld [vmem:[#allocation3 + $0x18] sm:$0xff] }
0x14af   :  { %1184 = vst.msk [vmem:[#allocation3 + $0x30] sm:$0xff] %vm51_vm0, %v1181_v20  ;;  %1405 = vmatmul.msk.f32.gmra.mxu0 %vm51_vm0, %v1276_v50 }
0x14b6   :  { %v1280_v27 = vld [vmem:[#allocation3 + $0x30] sm:$0xff] }
0x14b7   :  { %1406 = vmatmul.msk.f32.gmra.mxu0 %vm51_vm0, %v1277_v26 }
0x150b   :  { %v1245_v53 = vpop.permute.xlu1 %1244 }
0x150c   :  { %v1247_v59 = vadd.f32 %v1245_v53, %v1237_v52 }
0x150e   :  { %1555 = vtanh.f32 %v1247_v59  ;;  %1269 = vrot.lane.b32.xlu0 %v1247_v59, %s1561_s4 }
0x1514   :  { %v1556_v63 = vpop.eup %1555 }
0x1515   :  { %1250 = vrot.lane.b32.xlu1 %v1556_v63, %s1560_s5 }
0x151d   :  { %912 = vrot.lane.b32.xlu1 %v2084_v54, %s1559_s21 }
0x1524   :  { %v1334_v0 = vpop.f32.mrf.mxu0 }
0x1525   :  { %v1335_v3 = vadd.f32 %v2184_v31, %v1334_v0 }
0x1527   :  { %1356 = vst [vmem:[%s2266_s9 + $0x8] sm:$0xff] %v1335_v3 }
0x152c   :  { %v1337_v39 = vpop.f32.mrf.mxu0 }
0x152d   :  { %v1338_v4 = vadd.f32 %v2184_v31, %v1337_v39 }
0x152f   :  { %1357 = vst [vmem:[%s2266_s9 + $0x10] sm:$0xff] %v1338_v4 }
0x1534   :  { %v1340_v35 = vpop.f32.mrf.mxu0 }
0x1535   :  { %v1341_v5 = vadd.f32 %v2184_v31, %v1340_v35 }
0x1537   :  { %1358 = vst [vmem:[%s2266_s9 + $0x18] sm:$0xff] %v1341_v5 }
0x1580   :  { %v1270_v54 = vpop.permute.xlu0 %1269 }
0x1581   :  { %1402 = vst.msk [vmem:[%s2265_s11 + $0x8] sm:$0xff] %vm51_vm0, %v1270_v54 }
0x1587   :  { %v1251_v10 = vpop.permute.xlu1 %1250 }
0x1588   :  { %v1253_v36 = vmul.f32 %v1251_v10, %v1236_v45 }
0x158a   :  { %1255 = vrot.lane.b32.xlu1 %v1253_v36, %s1559_s21 }
0x158f   :  { %v913_v7 = vpop.permute.xlu1 %912 }
0x1590   :  { %916 = vst.msk [vmem:[#allocation3 + $0x20] sm:$0xff] %vm51_vm0, %v913_v7 }
0x1597   :  { %v1278_v25 = vld [vmem:[#allocation3 + $0x20] sm:$0xff] }
0x1598   :  { %1407 = vmatmul.msk.f32.gmra.mxu0 %vm51_vm0, %v1278_v25 }
0x15a0   :  { %1408 = vmatmul.msk.f32.gmra.mxu0 %vm51_vm0, %v1279_v12 }
0x15a8   :  { %1409 = vmatmul.msk.f32.gmra.mxu0 %vm51_vm0, %v1280_v27 }
0x15fc   :  { %v1256_v22 = vpop.permute.xlu1 %1255 }
0x15fd   :  { %1259 = vst.msk [vmem:[#allocation3 + $0x38] sm:$0xff] %vm51_vm0, %v1256_v22 }
0x15fe   :  { %1401 = vst.msk [vmem:[%s2264_s10 + $0x8] sm:$0xff] %vm51_vm0, %v1256_v22 }
0x1604   :  { %v1281_v8 = vld [vmem:[#allocation3 + $0x38] sm:$0xff] }
0x1605   :  { %1410 = vmatmul.msk.f32.gmra.mxu0 %vm51_vm0, %v1281_v8 }
0x1615   :  { %v1343_v56 = vpop.f32.mrf.mxu0 }
0x1616   :  { %v1344_v6 = vadd.f32 %v2184_v31, %v1343_v56 }
0x1618   :  { %1359 = vst [vmem:[%s2266_s9 + $0x20] sm:$0xff] %v1344_v6 }
0x161d   :  { %v1346_v11 = vpop.f32.mrf.mxu0 }
0x161e   :  { %v1347_v9 = vadd.f32 %v2184_v31, %v1346_v11 }
0x1620   :  { %1360 = vst [vmem:[%s2266_s9 + $0x28] sm:$0xff] %v1347_v9 }
0x1625   :  { %v1349_v57 = vpop.f32.mrf.mxu0 }
0x1626   :  { %v1350_v58 = vadd.f32 %v2184_v31, %v1349_v57 }
0x1628   :  { %1361 = vst [vmem:[%s2266_s9 + $0x30] sm:$0xff] %v1350_v58 }
0x1682   :  { %v1352_v42 = vpop.f32.mrf.mxu0 }
0x1683   :  { %v1353_v1 = vadd.f32 %v2184_v31, %v1352_v42 }
0x1685   :  { %1362 = vst [vmem:[%s2266_s9 + $0x38] sm:$0xff] %v1353_v1 }

</bundles_post_ra>
